<compile_context>
chip_gen: v7x
topology: tpu7x:2x2x1
jax: 0.10.0
libtpu: 0.0.40
codegen_flags: <defaults>
</compile_context>

<pallas_src>
from functools import partial

import jax
import jax.numpy as jnp
from jax.experimental import pallas as pl
from jax.experimental.pallas import tpu as pltpu


def conv3x3_tanh_kernel(x_ref, w_ref, o_ref):
    # x_ref: [Bt, H+2, W+2, Cin]  bf16  (spatially padded NHWC block)
    # w_ref: [3, 3, Cin, Cout]    bf16  (w_ref[dy, dx] = Cin x Cout tap matrix)
    # o_ref: [Bt, Cout, H*W]      f32   (lane-dense: last dim multiple of 128)
    bt, hp2, wp2, cin = x_ref.shape
    h, w = hp2 - 2, wp2 - 2
    cout = w_ref.shape[-1]
    m = bt * h * w

    acc = jnp.zeros((m, cout), jnp.float32)
    for dy in range(3):
        # One band load per dy: 3 loads of [Bt, H, W+2, Cin] instead of 9
        # overlapping [Bt, H, W, Cin] loads; keeps live bf16 values small.
        band = x_ref[:, dy:dy + h, :, :]                       # bf16
        for dx in range(3):
            xs = band[:, :, dx:dx + w, :].reshape(m, cin)      # bf16, sublane shift
            acc = acc + jnp.dot(
                xs, w_ref[dy, dx], preferred_element_type=jnp.float32
            )

    # One small transpose per step -> lane-dense [Bt, Cout, H*W] store.
    # tanh runs after the transpose (fewer, fuller vregs through the EUP).
    out_t = jnp.transpose(acc.reshape(bt, h * w, cout), (0, 2, 1))
    o_ref[...] = jnp.tanh(out_t)


def _pick_block_b(B, H, W, Cin):
    """Images folded into one grid step (the matmul M dimension)."""
    in_blk = (H + 2) * (W + 2) * Cin * 2            # bf16 bytes per image
    by_vmem = max(1, (4 << 20) // max(in_blk, 1))   # keep input block <= ~4 MiB
    by_grid = max(1, B // 2)                        # keep >= 2 grid steps (v7x: 2 TCs)
    return max(1, min(8, B, by_vmem, by_grid))


def _vmem_limit_bytes(bt, H, W, Cin, Cout):
    in_blk = bt * (H + 2) * (W + 2) * Cin * 2            # bf16 input block
    out_blk = bt * max(Cout, 8) * H * W * 4              # f32 output block (sublane-padded)
    w_blk = 9 * Cin * 128 * 2                            # lane-padded weight taps
    live = bt * H * W * (128 * 4 + 4 * Cin * 2)          # acc (lane-padded) + live slices
    est = 2 * (in_blk + out_blk + w_blk) + live          # double-buffered blocks + kernel-live
    return int(min(max(2 * est, 16 << 20), 48 << 20))


@partial(jax.jit, static_argnames=("block_b",))
def get_image_g_fwd(h_code, weight, block_b=None):
    """h_code: [B, Cin, H, W] f32 (NCHW). weight: [Cout, Cin, 3, 3] f32.
    Returns tanh(conv3x3(h_code)) as [B, Cout, H, W] f32 (matches PyTorch)."""
    B, Cin, H, W = h_code.shape
    Cout = weight.shape[0]

    bt = block_b if block_b is not None else _pick_block_b(B, H, W, Cin)
    Bp = -(-B // bt) * bt                           # pad batch to a multiple of bt

    # Layout plumbing in the wrapper: NCHW -> NHWC, pad batch + spatial, bf16.
    x = jnp.transpose(h_code, (0, 2, 3, 1))
    x = jnp.pad(x, ((0, Bp - B), (1, 1), (1, 1), (0, 0)))
    x = x.astype(jnp.bfloat16)                      # [Bp, H+2, W+2, Cin]

    # [Cout, Cin, 3, 3] -> [3(dy), 3(dx), Cin, Cout]
    w_taps = jnp.transpose(weight, (2, 3, 1, 0)).astype(jnp.bfloat16)

    out = pl.pallas_call(
        conv3x3_tanh_kernel,
        out_shape=jax.ShapeDtypeStruct((Bp, Cout, H * W), jnp.float32),
        grid_spec=pltpu.PrefetchScalarGridSpec(
            num_scalar_prefetch=0,
            grid=(Bp // bt,),
            in_specs=[
                pl.BlockSpec((bt, H + 2, W + 2, Cin), lambda b: (b, 0, 0, 0)),
                pl.BlockSpec((3, 3, Cin, Cout), lambda b: (0, 0, 0, 0)),
            ],
            out_specs=pl.BlockSpec((bt, Cout, H * W), lambda b: (b, 0, 0)),
        ),
        compiler_params=pltpu.CompilerParams(
            dimension_semantics=("parallel",),
            vmem_limit_bytes=_vmem_limit_bytes(bt, H, W, Cin, Cout),
        ),
    )(x, w_taps)

    # Lane-dense [Bp, Cout, H*W] -> NCHW is now a plain slice + reshape.
    return out[:B].reshape(B, Cout, H, W)


def reference_fwd(h_code, weight):
    y = jax.lax.conv_general_dilated(
        h_code, weight,
        window_strides=(1, 1),
        padding=((1, 1), (1, 1)),
        dimension_numbers=("NCHW", "OIHW", "NCHW"),
    )
    return jnp.tanh(y)


if __name__ == "__main__":
    key = jax.random.PRNGKey(0)
    k_x, k_w = jax.random.split(key)

    B, NGF, H, W = 2, 32, 16, 16
    h_code = jax.random.normal(k_x, (B, NGF, H, W), jnp.float32)

    # Conv2d default-style init: uniform(+-1/sqrt(fan_in)), fan_in = Cin*3*3.
    bound = float((NGF * 9) ** -0.5)
    weight = jax.random.uniform(k_w, (3, NGF, 3, 3), jnp.float32, -bound, bound)

    out = get_image_g_fwd(h_code, weight)
    out = jax.block_until_ready(out)

    ref = reference_fwd(h_code, weight)
    assert out.shape == (B, 3, H, W)
    # bf16 matmul inputs (f32 accumulation) -> loosened tolerance vs f32 ref.
    assert jnp.allclose(out, ref, atol=2e-2, rtol=2e-2), "mismatch vs JAX reference"

    print("KERNEL_OK")
</pallas_src>

<mosaic_0001>
module attributes {stable_mosaic.version = 11 : i64} {
  func.func @conv3x3_tanh_kernel(%arg0: i32, %arg1: memref<1x18x18x32xbf16, #tpu.memory_space<vmem>>, %arg2: memref<3x3x32x3xbf16, #tpu.memory_space<vmem>>, %arg3: memref<1x3x256xf32, #tpu.memory_space<vmem>>) attributes {dimension_semantics = [#tpu.dimension_semantics<parallel>], iteration_bounds = array<i64: 2>, scalar_prefetch = 0 : i64, scratch_operands = 0 : i64, tpu.core_type = #tpu.core_type<tc>, window_params = [{transform_indices = @transform_0, window_bounds = array<i64: 1, 18, 18, 32>}, {pipeline_mode = #tpu.pipeline_mode<synchronous>, transform_indices = @transform_1, window_bounds = array<i64: 3, 3, 32, 3>}, {transform_indices = @transform_2, window_bounds = array<i64: 1, 3, 256>}]} {
    %cst = arith.constant 0.000000e+00 : f32
    %0 = vector.broadcast %cst : f32 to vector<256x3xf32>
    %c0 = arith.constant 0 : index
    %c0_0 = arith.constant 0 : index
    %c0_1 = arith.constant 0 : index
    %c0_2 = arith.constant 0 : index
    %1 = vector.load %arg1[%c0, %c0_0, %c0_1, %c0_2] : memref<1x18x18x32xbf16, #tpu.memory_space<vmem>>, vector<1x16x18x32xbf16>
    %2 = vector.extract_strided_slice %1 {offsets = [0, 0, 0, 0], sizes = [1, 16, 16, 32], strides = [1, 1, 1, 1]} : vector<1x16x18x32xbf16> to vector<1x16x16x32xbf16>
    %3 = vector.shape_cast %2 : vector<1x16x16x32xbf16> to vector<256x32xbf16>
    %c0_3 = arith.constant 0 : index
    %c0_4 = arith.constant 0 : index
    %c0_5 = arith.constant 0 : index
    %c0_6 = arith.constant 0 : index
    %4 = vector.load %arg2[%c0_3, %c0_4, %c0_5, %c0_6] : memref<3x3x32x3xbf16, #tpu.memory_space<vmem>>, vector<1x1x32x3xbf16>
    %5 = vector.shape_cast %4 : vector<1x1x32x3xbf16> to vector<32x3xbf16>
    %cst_7 = arith.constant dense<0.000000e+00> : vector<256x3xf32>
    %6 = tpu.matmul %3, %5, %cst_7 {dimension_numbers = #tpu.dot_dimension_numbers<[1], [0], [0], [1], [0, 0, 1, 1], [], []>} : vector<256x32xbf16>, vector<32x3xbf16>, vector<256x3xf32> -> vector<256x3xf32>
    %7 = arith.addf %0, %6 : vector<256x3xf32>
    %8 = vector.extract_strided_slice %1 {offsets = [0, 0, 1, 0], sizes = [1, 16, 16, 32], strides = [1, 1, 1, 1]} : vector<1x16x18x32xbf16> to vector<1x16x16x32xbf16>
    %9 = vector.shape_cast %8 : vector<1x16x16x32xbf16> to vector<256x32xbf16>
    %c0_8 = arith.constant 0 : index
    %c1 = arith.constant 1 : index
    %c0_9 = arith.constant 0 : index
    %c0_10 = arith.constant 0 : index
    %10 = vector.load %arg2[%c0_8, %c1, %c0_9, %c0_10] : memref<3x3x32x3xbf16, #tpu.memory_space<vmem>>, vector<1x1x32x3xbf16>
    %11 = vector.shape_cast %10 : vector<1x1x32x3xbf16> to vector<32x3xbf16>
    %cst_11 = arith.constant dense<0.000000e+00> : vector<256x3xf32>
    %12 = tpu.matmul %9, %11, %cst_11 {dimension_numbers = #tpu.dot_dimension_numbers<[1], [0], [0], [1], [0, 0, 1, 1], [], []>} : vector<256x32xbf16>, vector<32x3xbf16>, vector<256x3xf32> -> vector<256x3xf32>
    %13 = arith.addf %7, %12 : vector<256x3xf32>
    %14 = vector.extract_strided_slice %1 {offsets = [0, 0, 2, 0], sizes = [1, 16, 16, 32], strides = [1, 1, 1, 1]} : vector<1x16x18x32xbf16> to vector<1x16x16x32xbf16>
    %15 = vector.shape_cast %14 : vector<1x16x16x32xbf16> to vector<256x32xbf16>
    %c0_12 = arith.constant 0 : index
    %c2 = arith.constant 2 : index
    %c0_13 = arith.constant 0 : index
    %c0_14 = arith.constant 0 : index
    %16 = vector.load %arg2[%c0_12, %c2, %c0_13, %c0_14] : memref<3x3x32x3xbf16, #tpu.memory_space<vmem>>, vector<1x1x32x3xbf16>
    %17 = vector.shape_cast %16 : vector<1x1x32x3xbf16> to vector<32x3xbf16>
    %cst_15 = arith.constant dense<0.000000e+00> : vector<256x3xf32>
    %18 = tpu.matmul %15, %17, %cst_15 {dimension_numbers = #tpu.dot_dimension_numbers<[1], [0], [0], [1], [0, 0, 1, 1], [], []>} : vector<256x32xbf16>, vector<32x3xbf16>, vector<256x3xf32> -> vector<256x3xf32>
    %19 = arith.addf %13, %18 : vector<256x3xf32>
    %c0_16 = arith.constant 0 : index
    %c1_17 = arith.constant 1 : index
    %c0_18 = arith.constant 0 : index
    %c0_19 = arith.constant 0 : index
    %20 = vector.load %arg1[%c0_16, %c1_17, %c0_18, %c0_19] : memref<1x18x18x32xbf16, #tpu.memory_space<vmem>>, vector<1x16x18x32xbf16>
    %21 = vector.extract_strided_slice %20 {offsets = [0, 0, 0, 0], sizes = [1, 16, 16, 32], strides = [1, 1, 1, 1]} : vector<1x16x18x32xbf16> to vector<1x16x16x32xbf16>
    %22 = vector.shape_cast %21 : vector<1x16x16x32xbf16> to vector<256x32xbf16>
    %c1_20 = arith.constant 1 : index
    %c0_21 = arith.constant 0 : index
    %c0_22 = arith.constant 0 : index
    %c0_23 = arith.constant 0 : index
    %23 = vector.load %arg2[%c1_20, %c0_21, %c0_22, %c0_23] : memref<3x3x32x3xbf16, #tpu.memory_space<vmem>>, vector<1x1x32x3xbf16>
    %24 = vector.shape_cast %23 : vector<1x1x32x3xbf16> to vector<32x3xbf16>
    %cst_24 = arith.constant dense<0.000000e+00> : vector<256x3xf32>
    %25 = tpu.matmul %22, %24, %cst_24 {dimension_numbers = #tpu.dot_dimension_numbers<[1], [0], [0], [1], [0, 0, 1, 1], [], []>} : vector<256x32xbf16>, vector<32x3xbf16>, vector<256x3xf32> -> vector<256x3xf32>
    %26 = arith.addf %19, %25 : vector<256x3xf32>
    %27 = vector.extract_strided_slice %20 {offsets = [0, 0, 1, 0], sizes = [1, 16, 16, 32], strides = [1, 1, 1, 1]} : vector<1x16x18x32xbf16> to vector<1x16x16x32xbf16>
    %28 = vector.shape_cast %27 : vector<1x16x16x32xbf16> to vector<256x32xbf16>
    %c1_25 = arith.constant 1 : index
    %c1_26 = arith.constant 1 : index
    %c0_27 = arith.constant 0 : index
    %c0_28 = arith.constant 0 : index
    %29 = vector.load %arg2[%c1_25, %c1_26, %c0_27, %c0_28] : memref<3x3x32x3xbf16, #tpu.memory_space<vmem>>, vector<1x1x32x3xbf16>
    %30 = vector.shape_cast %29 : vector<1x1x32x3xbf16> to vector<32x3xbf16>
    %cst_29 = arith.constant dense<0.000000e+00> : vector<256x3xf32>
    %31 = tpu.matmul %28, %30, %cst_29 {dimension_numbers = #tpu.dot_dimension_numbers<[1], [0], [0], [1], [0, 0, 1, 1], [], []>} : vector<256x32xbf16>, vector<32x3xbf16>, vector<256x3xf32> -> vector<256x3xf32>
    %32 = arith.addf %26, %31 : vector<256x3xf32>
    %33 = vector.extract_strided_slice %20 {offsets = [0, 0, 2, 0], sizes = [1, 16, 16, 32], strides = [1, 1, 1, 1]} : vector<1x16x18x32xbf16> to vector<1x16x16x32xbf16>
    %34 = vector.shape_cast %33 : vector<1x16x16x32xbf16> to vector<256x32xbf16>
    %c1_30 = arith.constant 1 : index
    %c2_31 = arith.constant 2 : index
    %c0_32 = arith.constant 0 : index
    %c0_33 = arith.constant 0 : index
    %35 = vector.load %arg2[%c1_30, %c2_31, %c0_32, %c0_33] : memref<3x3x32x3xbf16, #tpu.memory_space<vmem>>, vector<1x1x32x3xbf16>
    %36 = vector.shape_cast %35 : vector<1x1x32x3xbf16> to vector<32x3xbf16>
    %cst_34 = arith.constant dense<0.000000e+00> : vector<256x3xf32>
    %37 = tpu.matmul %34, %36, %cst_34 {dimension_numbers = #tpu.dot_dimension_numbers<[1], [0], [0], [1], [0, 0, 1, 1], [], []>} : vector<256x32xbf16>, vector<32x3xbf16>, vector<256x3xf32> -> vector<256x3xf32>
    %38 = arith.addf %32, %37 : vector<256x3xf32>
    %c0_35 = arith.constant 0 : index
    %c2_36 = arith.constant 2 : index
    %c0_37 = arith.constant 0 : index
    %c0_38 = arith.constant 0 : index
    %39 = vector.load %arg1[%c0_35, %c2_36, %c0_37, %c0_38] : memref<1x18x18x32xbf16, #tpu.memory_space<vmem>>, vector<1x16x18x32xbf16>
    %40 = vector.extract_strided_slice %39 {offsets = [0, 0, 0, 0], sizes = [1, 16, 16, 32], strides = [1, 1, 1, 1]} : vector<1x16x18x32xbf16> to vector<1x16x16x32xbf16>
    %41 = vector.shape_cast %40 : vector<1x16x16x32xbf16> to vector<256x32xbf16>
    %c2_39 = arith.constant 2 : index
    %c0_40 = arith.constant 0 : index
    %c0_41 = arith.constant 0 : index
    %c0_42 = arith.constant 0 : index
    %42 = vector.load %arg2[%c2_39, %c0_40, %c0_41, %c0_42] : memref<3x3x32x3xbf16, #tpu.memory_space<vmem>>, vector<1x1x32x3xbf16>
    %43 = vector.shape_cast %42 : vector<1x1x32x3xbf16> to vector<32x3xbf16>
    %cst_43 = arith.constant dense<0.000000e+00> : vector<256x3xf32>
    %44 = tpu.matmul %41, %43, %cst_43 {dimension_numbers = #tpu.dot_dimension_numbers<[1], [0], [0], [1], [0, 0, 1, 1], [], []>} : vector<256x32xbf16>, vector<32x3xbf16>, vector<256x3xf32> -> vector<256x3xf32>
    %45 = arith.addf %38, %44 : vector<256x3xf32>
    %46 = vector.extract_strided_slice %39 {offsets = [0, 0, 1, 0], sizes = [1, 16, 16, 32], strides = [1, 1, 1, 1]} : vector<1x16x18x32xbf16> to vector<1x16x16x32xbf16>
    %47 = vector.shape_cast %46 : vector<1x16x16x32xbf16> to vector<256x32xbf16>
    %c2_44 = arith.constant 2 : index
    %c1_45 = arith.constant 1 : index
    %c0_46 = arith.constant 0 : index
    %c0_47 = arith.constant 0 : index
    %48 = vector.load %arg2[%c2_44, %c1_45, %c0_46, %c0_47] : memref<3x3x32x3xbf16, #tpu.memory_space<vmem>>, vector<1x1x32x3xbf16>
    %49 = vector.shape_cast %48 : vector<1x1x32x3xbf16> to vector<32x3xbf16>
    %cst_48 = arith.constant dense<0.000000e+00> : vector<256x3xf32>
    %50 = tpu.matmul %47, %49, %cst_48 {dimension_numbers = #tpu.dot_dimension_numbers<[1], [0], [0], [1], [0, 0, 1, 1], [], []>} : vector<256x32xbf16>, vector<32x3xbf16>, vector<256x3xf32> -> vector<256x3xf32>
    %51 = arith.addf %45, %50 : vector<256x3xf32>
    %52 = vector.extract_strided_slice %39 {offsets = [0, 0, 2, 0], sizes = [1, 16, 16, 32], strides = [1, 1, 1, 1]} : vector<1x16x18x32xbf16> to vector<1x16x16x32xbf16>
    %53 = vector.shape_cast %52 : vector<1x16x16x32xbf16> to vector<256x32xbf16>
    %c2_49 = arith.constant 2 : index
    %c2_50 = arith.constant 2 : index
    %c0_51 = arith.constant 0 : index
    %c0_52 = arith.constant 0 : index
    %54 = vector.load %arg2[%c2_49, %c2_50, %c0_51, %c0_52] : memref<3x3x32x3xbf16, #tpu.memory_space<vmem>>, vector<1x1x32x3xbf16>
    %55 = vector.shape_cast %54 : vector<1x1x32x3xbf16> to vector<32x3xbf16>
    %cst_53 = arith.constant dense<0.000000e+00> : vector<256x3xf32>
    %56 = tpu.matmul %53, %55, %cst_53 {dimension_numbers = #tpu.dot_dimension_numbers<[1], [0], [0], [1], [0, 0, 1, 1], [], []>} : vector<256x32xbf16>, vector<32x3xbf16>, vector<256x3xf32> -> vector<256x3xf32>
    %57 = arith.addf %51, %56 : vector<256x3xf32>
    %58 = vector.shape_cast %57 : vector<256x3xf32> to vector<1x256x3xf32>
    %59 = tpu.transpose %58, [0, 2, 1] : vector<1x256x3xf32> -> vector<1x3x256xf32>
    %60 = math.tanh %59 : vector<1x3x256xf32>
    %c0_54 = arith.constant 0 : index
    %c0_55 = arith.constant 0 : index
    %c0_56 = arith.constant 0 : index
    %61 = vector.load %arg3[%c0_54, %c0_55, %c0_56] : memref<1x3x256xf32, #tpu.memory_space<vmem>>, vector<1x3x256xf32>
    tpu.vector_store %arg3[%c0_54, %c0_55, %c0_56], %60 {strides = array<i32>} : memref<1x3x256xf32, #tpu.memory_space<vmem>>, vector<1x3x256xf32>,
    return
  }
  func.func @transform_0(%arg0: i32) -> (i32, i32, i32, i32) {
    %c0_i32 = arith.constant 0 : i32
    %c0_i32_0 = arith.constant 0 : i32
    %c0_i32_1 = arith.constant 0 : i32
    %c0_i32_2 = arith.constant 0 : i32
    return %arg0, %c0_i32, %c0_i32_0, %c0_i32_1 : i32, i32, i32, i32
  }
  func.func @transform_1(%arg0: i32) -> (i32, i32, i32, i32) {
    %c0_i32 = arith.constant 0 : i32
    %c0_i32_0 = arith.constant 0 : i32
    %c0_i32_1 = arith.constant 0 : i32
    %c0_i32_2 = arith.constant 0 : i32
    %c0_i32_3 = arith.constant 0 : i32
    return %c0_i32, %c0_i32_0, %c0_i32_1, %c0_i32_2 : i32, i32, i32, i32
  }
  func.func @transform_2(%arg0: i32) -> (i32, i32, i32) {
    %c0_i32 = arith.constant 0 : i32
    %c0_i32_0 = arith.constant 0 : i32
    %c0_i32_1 = arith.constant 0 : i32
    return %arg0, %c0_i32, %c0_i32_0 : i32, i32, i32
  }
}

</mosaic_0001>

<bundles_post_ra>
// kernel: get_image_g_fwd.1
= control target key start
LH: loop header
LB: loop body
LE: loop exit
PB: predicated region body
PF: predicated region fallthrough
CT: control target
= control target key end

     0   :  { %s6207_s9 = smov 0   ;;  %s8191_s0 = inlined_call_operand.vmem [shape: bf16[2,18,18,32], index: 0, kind: input, shape index: {}]   ;;  %s8192_s1 = inlined_call_operand.vmem [shape: bf16[3,3,32,3], index: 1, kind: input, shape index: {}]   ;;  %s8193_s2 = inlined_call_operand.vmem [shape: f32[2,3,256], index: 2, kind: output, shape index: {}]  }
   0x1 LB: > { %s4745_s10 = sadd.s32 4294967295, %s6190_s9   ;;  %p4749_p0 = scmp.ge.s32.totalorder %s6190_s9, 1  ;;  %s6190_s9 = sphi %s6207_s9, %s12_s9  }
   0x2   : > { %p112_p1 = scmp.lt.s32.totalorder %s6190_s9, 3 }
   0x4   : > { %p113_p2 = pnand %p4749_p0, %p112_p1 }
   0x6   : > { %116 = sbr.rel (%p113_p2) target bundleno = 702 (0x2be), region = 28 }
   0xd   : > { %v5993_v0 = vld [vmem:[%s8192_s1 + $0x10] sm:$0xff]   ;;  %p134_p3 = scmp.lt.s32.totalorder %s4745_s10, 1  ;;  %v5994_v1 = vld [vmem:[%s8192_s1 + $0x40] sm:$0xff]   ;;  %v5995_v2 = vld [vmem:[%s8192_s1 + $0x18] sm:$0xff]   ;;  %vm197_vm0 = vsmask.f32 3328 }
   0xe   : > { %5400 = vmatprep.subr.bf16.mxu1 %v5993_v0  ;;  %5544 = vmatprep.subr.bf16.mxu0 %v5994_v1  ;;  %v5996_v3 = vld [vmem:[%s8192_s1 + $0x48] sm:$0xff]   ;;  %v6233_v4 = vld [vmem:[%s8192_s1] sm:$0xff]   ;;  %vm198_vm1 = vsmask.f32 7440  ;;  %v6243_v5 = vld [vmem:[%s8192_s1 + $0x50] sm:$0xff]   ;;  %vm649_vm3 = vcmask 261120  }
   0xf   : > { %s8292_s10 = smov (!%p134_p3, %s4745_s10), 1  ;;  %5401 = vmatpush3.bf16.msra.mxu1 %v5993_v0  ;;  %5545 = vmatpush3.bf16.msra.mxu0 %v5994_v1  ;;  %vm6268_vm2 = vmor %vm197_vm0, %vm198_vm1  ;;  %vm1176_vm4 = vcmask 1042432   ;;  %vm1177_vm5 = vcmask 1046532  }
  0x10   : > { %5402 = vmatprep.subr.bf16.mxu1 %v5995_v2  ;;  %s5984_s19 = smul.u32 216, %s8292_s10  ;;  %5546 = vmatprep.subr.bf16.mxu0 %v5996_v3  ;;  %vm6523_vm6 = vmor %vm1176_vm4, %vm1177_vm5 }
  0x12   : > { %s6238_s24 = scalar_lea.vmem %s8191_s0, %s5984_s19 }
  0x13   : > { %5403 = vmatpush3.bf16.msra.mxu1 %v5995_v2  ;;  %v145_v6 = vld [vmem:[%s6238_s24] sm:$0xf]  ;;  %v146_v7 = vld [vmem:[%s6238_s24 + $0x4] sm:$0xf]  ;;  %v147_v8 = vld [vmem:[%s6238_s24 + $0x8] sm:$0x1]  ;;  %5547 = vmatpush3.bf16.msra.mxu0 %v5996_v3 }
  0x14   : > { %v201_v9 = vshrl.u32 %v145_v6, 16  ;;  %v204_v10 = vshll.u32 %v145_v6, 16  ;;  %v210_v11 = vshll.u32 %v146_v7, 16  ;;  %v214_v12 = vshrl.u32 %v146_v7, 16  ;;  %5436 = vmatprep.subr.bf16.mxu1 %v6233_v4  ;;  %v6250_v13 = vld [vmem:[%s6238_s24 + $0xc] sm:$0xf]  ;;  %5580 = vmatprep.subr.bf16.mxu0 %v6243_v5 }
  0x15   : > { %v220_v14 = vshll.u32 %v147_v8, 16  ;;  %v6253_v15 = vld [vmem:[%s6238_s24 + $0x10] sm:$0xf]  ;;  %v6256_v16 = vld [vmem:[%s6238_s24 + $0x14] sm:$0x1]  ;;  %v1985_v22 = vshrl.u32 %v6250_v13, 16 }
  0x16   : > { %v203_v17 = vrot.slane %v201_v9, 4  ;;  %v206_v18 = vrot.slane %v204_v10, 5  ;;  %v212_v19 = vrot.slane %v210_v11, 5  ;;  %v216_v20 = vrot.slane %v214_v12, 4  ;;  %v148_v29 = vld [vmem:[%s6238_s24 + $0xc] sm:$0xf] }
  0x17   : > { %v222_v21 = vrot.slane %v220_v14, 5  ;;  %v1988_v23 = vshll.u32 %v6250_v13, 16  ;;  %v1994_v24 = vshll.u32 %v6253_v15, 16  ;;  %v1998_v27 = vshrl.u32 %v6253_v15, 16  ;;  %v149_v30 = vld [vmem:[%s6238_s24 + $0x10] sm:$0xf] }
  0x18   : > { %v207_v25 = vor.u32 %v206_v18, %v203_v17  ;;  %v217_v26 = vor.u32 %v216_v20, %v212_v19  ;;  %v2004_v28 = vshll.u32 %v6256_v16, 16  ;;  %v1987_v32 = vrot.slane %v1985_v22, 4  ;;  %v150_v40 = vld [vmem:[%s6238_s24 + $0x14] sm:$0x1]  ;;  %v6278_v52 = vld [vmem:[%s6238_s24 + $0x18] sm:$0xf] }
  0x19   : > { %v1990_v33 = vrot.slane %v1988_v23, 5  ;;  %v1996_v34 = vrot.slane %v1994_v24, 5  ;;  %v2000_v37 = vrot.slane %v1998_v27, 4  ;;  %v225_v41 = vshrl.u32 %v148_v29, 16  ;;  %v6281_v57 = vld [vmem:[%s6238_s24 + $0x1c] sm:$0xf] }
  0x1a   : > { %v208_v35 = vrot.slane %v207_v25, 4  ;;  %v218_v36 = vrot.slane %v217_v26, 4  ;;  %v2006_v38 = vrot.slane %v2004_v28, 5  ;;  %v228_v42 = vshll.u32 %v148_v29, 16  ;;  %v6288_v61 = vld [vmem:[%s6238_s24 + $0x20] sm:$0x1] }
  0x1b   : > { %v1991_v39 = vor.u32 %v1990_v33, %v1987_v32  ;;  %v234_v43 = vshll.u32 %v149_v30, 16  ;;  %v2001_v46 = vor.u32 %v2000_v37, %v1996_v34  ;;  %v238_v47 = vshrl.u32 %v149_v30, 16  ;;  %v151_v8 = vld [vmem:[%s6238_s24 + $0x18] sm:$0xf]  ;;  %v152_v14 = vld [vmem:[%s6238_s24 + $0x1c] sm:$0xf] }
  0x1c   : > { %v213_v44 = vsel %vm6268_vm2, %v208_v35, %v212_v19  ;;  %v223_v45 = vsel %vm6268_vm2, %v218_v36, %v222_v21  ;;  %v227_v50 = vrot.slane %v225_v41, 4  ;;  %v230_v51 = vrot.slane %v228_v42, 5  ;;  %v153_v21 = vld [vmem:[%s6238_s24 + $0x20] sm:$0x1]  ;;  %v6308_v26 = vld [vmem:[%s6238_s24 + $0x24] sm:$0xf] }
  0x1d   : > { %v4757_v48 = vcombine.low %v213_v44, %v223_v45  ;;  %v1992_v49 = vrot.slane %v1991_v39, 4  ;;  %v2002_v53 = vrot.slane %v2001_v46, 4  ;;  %v236_v54 = vrot.slane %v234_v43, 5  ;;  %v6311_v32 = vld [vmem:[%s6238_s24 + $0x28] sm:$0xf] }
  0x1e   : > { %v240_v55 = vrot.slane %v238_v47, 4  ;;  %v244_v56 = vshll.u32 %v150_v40, 16  ;;  %v2695_v59 = vrot.slane %v6256_v16, 5  ;;  %v231_v60 = vor.u32 %v230_v51, %v227_v50  ;;  %v6000_v33 = vld [vmem:[%s8192_s1 + $0x8] sm:$0xff]   ;;  %v154_v43 = vld [vmem:[%s6238_s24 + $0x24] sm:$0xf] }
  0x1f   : > { %5404 = vmatprep.mubr.msk.bf16.mxu1 %vm649_vm3, %v4757_v48  ;;  %v1997_v58 = vsel %vm6268_vm2, %v1992_v49, %v1996_v34  ;;  %v2007_v62 = vsel %vm6268_vm2, %v2002_v53, %v2006_v38  ;;  %v2009_v1 = vshrl.u32 %v6278_v52, 16  ;;  %v2012_v6 = vshll.u32 %v6278_v52, 16  ;;  %v6317_v38 = vld [vmem:[%s6238_s24 + $0x2c] sm:$0x1]  ;;  %v6003_v48 = vld [vmem:[%s8192_s1 + $0x20] sm:$0xff]  }
  0x20   : > { %v241_v63 = vor.u32 %v240_v55, %v236_v54  ;;  %v246_v0 = vrot.slane %v244_v56, 5  ;;  %v4969_v2 = vcombine.low %v1997_v58, %v2007_v62  ;;  %v232_v3 = vrot.slane %v231_v60, 4 }
  0x21   : > { %v2018_v7 = vshll.u32 %v6281_v57, 16  ;;  %v2011_v10 = vrot.slane %v2009_v1, 4  ;;  %v2022_v11 = vshrl.u32 %v6281_v57, 16  ;;  %v2028_v12 = vshll.u32 %v6288_v61, 16  ;;  %v5999_v1 = vld [vmem:[%s8192_s1 + $0x58] sm:$0xff]  }
  0x22   : > { %v242_v9 = vrot.slane %v241_v63, 4  ;;  %5548 = vmatprep.mubr.msk.bf16.mxu0 %vm649_vm3, %v4969_v2  ;;  %v237_v17 = vsel %vm6268_vm2, %v232_v3, %v236_v54  ;;  %v2014_v18 = vrot.slane %v2012_v6, 5  ;;  %v2699_v20 = vrot.slane %v6281_v57, 5 }
  0x23   : > { %v2020_v19 = vrot.slane %v2018_v7, 5  ;;  %v2024_v23 = vrot.slane %v2022_v11, 4  ;;  %v2030_v24 = vrot.slane %v2028_v12, 5  ;;  %v2702_v25 = vrot.slane %v6288_v61, 5  ;;  %v156_v11 = vld [vmem:[%s6238_s24 + $0x2c] sm:$0x1] }
  0x24   : > { %v247_v22 = vsel %vm6268_vm2, %v242_v9, %v246_v0  ;;  %v2015_v28 = vor.u32 %v2014_v18, %v2011_v10  ;;  %v249_v29 = vshrl.u32 %v151_v8, 16  ;;  %v252_v30 = vshll.u32 %v151_v8, 16  ;;  %v155_v0 = vld [vmem:[%s6238_s24 + $0x28] sm:$0xf] }
  0x25   : > { %v4758_v27 = vcombine.low %v237_v17, %v247_v22  ;;  %v2025_v34 = vor.u32 %v2024_v23, %v2020_v19  ;;  %v258_v35 = vshll.u32 %v152_v14, 16  ;;  %v262_v36 = vshrl.u32 %v152_v14, 16  ;;  %v6343_v14 = vld [vmem:[%s6238_s24 + $0x30] sm:$0xf] }
  0x26   : > { %v268_v37 = vshll.u32 %v153_v21, 16  ;;  %v2016_v39 = vrot.slane %v2015_v28, 4  ;;  %v251_v40 = vrot.slane %v249_v29, 4  ;;  %v254_v41 = vrot.slane %v252_v30, 5  ;;  %v6349_v28 = vld [vmem:[%s6238_s24 + $0x34] sm:$0xf] }
  0x27   : > { %5405 = vmatmul.mubr.msk.bf16.vlgmr.msra.gmra.mrb[0].mxu1 %vm649_vm3, %v4758_v27  ;;  %v2033_v42 = vshrl.u32 %v6308_v26, 16  ;;  %v2026_v44 = vrot.slane %v2025_v34, 4  ;;  %v260_v45 = vrot.slane %v258_v35, 5  ;;  %v264_v46 = vrot.slane %v262_v36, 4  ;;  %v6354_v29 = vld [vmem:[%s8192_s1 + $0x60] sm:$0xff]  }
  0x28   : > { %5437 = vmatpush3.bf16.msra.mxu1 %v6233_v4  ;;  %v270_v47 = vrot.slane %v268_v37, 5  ;;  %v2021_v49 = vsel %vm6268_vm2, %v2016_v39, %v2020_v19  ;;  %v255_v50 = vor.u32 %v254_v41, %v251_v40  ;;  %v2036_v53 = vshll.u32 %v6308_v26, 16  ;;  %v6361_v39 = vld [vmem:[%s6238_s24 + $0x38] sm:$0x1]  ;;  %v157_v41 = vld [vmem:[%s6238_s24 + $0x30] sm:$0xf] }
  0x29   : > { %v2035_v51 = vrot.slane %v2033_v42, 4  ;;  %5438 = vmatprep.subr.bf16.mxu1 %v6000_v33  ;;  %v2031_v4 = vsel %vm6268_vm2, %v2026_v44, %v2030_v24  ;;  %v265_v54 = vor.u32 %v264_v46, %v260_v45  ;;  %v2042_v55 = vshll.u32 %v6311_v32, 16 }
  0x2a   : > { %v2046_v56 = vshrl.u32 %v6311_v32, 16  ;;  %v4970_v58 = vcombine.low %v2021_v49, %v2031_v4  ;;  %v256_v60 = vrot.slane %v255_v50, 4  ;;  %v2038_v62 = vrot.slane %v2036_v53, 5  ;;  %v158_v50 = vld [vmem:[%s6238_s24 + $0x34] sm:$0xf] }
  0x2b   : > { %v2052_v63 = vshll.u32 %v6317_v38, 16  ;;  %v266_v2 = vrot.slane %v265_v54, 4  ;;  %v2044_v3 = vrot.slane %v2042_v55, 5  ;;  %v273_v7 = vshrl.u32 %v154_v43, 16 }
  0x2c   : > { %v2048_v6 = vrot.slane %v2046_v56, 4  ;;  %5439 = vmatpush3.bf16.msra.mxu1 %v6000_v33  ;;  %5549 = vmatmul.mubr.msk.bf16.vlgmr.msra.gmra.mrb[0].mxu0 %vm649_vm3, %v4970_v58  ;;  %v261_v8 = vsel %vm6268_vm2, %v256_v60, %v260_v45  ;;  %v2039_v9 = vor.u32 %v2038_v62, %v2035_v51  ;;  %v276_v12 = vshll.u32 %v154_v43, 16  ;;  %v159_v60 = vld [vmem:[%s6238_s24 + $0x38] sm:$0x1] }
  0x2d   : > { %v2054_v10 = vrot.slane %v2052_v63, 5  ;;  %5472 = vmatprep.subr.bf16.mxu1 %v6003_v48  ;;  %5581 = vmatpush3.bf16.msra.mxu0 %v6243_v5  ;;  %v271_v17 = vsel %vm6268_vm2, %v266_v2, %v270_v47  ;;  %v275_v19 = vrot.slane %v273_v7, 4  ;;  %v282_v21 = vshll.u32 %v155_v0, 16 }
  0x2e   : > { %v2049_v18 = vor.u32 %v2048_v6, %v2044_v3  ;;  %v4759_v22 = vcombine.low %v261_v8, %v271_v17  ;;  %v2040_v23 = vrot.slane %v2039_v9, 4  ;;  %v278_v24 = vrot.slane %v276_v12, 5  ;;  %5582 = vmatprep.subr.bf16.mxu0 %v5999_v1 }
  0x2f   : > { %v286_v27 = vshrl.u32 %v155_v0, 16  ;;  %v284_v30 = vrot.slane %v282_v21, 5  ;;  %v292_v33 = vshll.u32 %v156_v11, 16  ;;  %v2057_v34 = vshrl.u32 %v6343_v14, 16 }
  0x30   : > { %v2050_v5 = vrot.slane %v2049_v18, 4  ;;  %5408 = vmatprep.mubr.msk.bf16.mxu1 %vm649_vm3, %v4759_v22  ;;  %v2045_v35 = vsel %vm6268_vm2, %v2040_v23, %v2044_v3  ;;  %v279_v36 = vor.u32 %v278_v24, %v275_v19  ;;  %v2060_v40 = vshll.u32 %v6343_v14, 16  ;;  %v6377_v3 = vld [vmem:[%s6238_s24 + $0x3c] sm:$0xf]  ;;  %v6385_v19 = vld [vmem:[%s6238_s24 + $0x44] sm:$0x1] }
  0x31   : > { %v288_v37 = vrot.slane %v286_v27, 4  ;;  %v294_v43 = vrot.slane %v292_v33, 5  ;;  %v2059_v44 = vrot.slane %v2057_v34, 4  ;;  %v2066_v45 = vshll.u32 %v6349_v28, 16  ;;  %5583 = vmatpush3.bf16.msra.mxu0 %v5999_v1 }
  0x32   : > { %v2055_v42 = vsel %vm6268_vm2, %v2050_v5, %v2054_v10  ;;  %v280_v47 = vrot.slane %v279_v36, 4  ;;  %v2062_v49 = vrot.slane %v2060_v40, 5  ;;  %5616 = vmatprep.subr.bf16.mxu0 %v6354_v29  ;;  %v2070_v53 = vshrl.u32 %v6349_v28, 16  ;;  %v6382_v10 = vld [vmem:[%s6238_s24 + $0x40] sm:$0xf] }
  0x33   : > { %v4971_v46 = vcombine.low %v2045_v35, %v2055_v42  ;;  %v289_v48 = vor.u32 %v288_v37, %v284_v30  ;;  %v2068_v51 = vrot.slane %v2066_v45, 5  ;;  %v2076_v4 = vshll.u32 %v6361_v39, 16  ;;  %v6395_v40 = vld [vmem:[%s6238_s24 + $0x3c] sm:$0xf]  ;;  %v6401_v45 = vld [vmem:[%s6238_s24 + $0x40] sm:$0xf] }
  0x34   : > { %v297_v54 = vshrl.u32 %v157_v41, 16  ;;  %v285_v55 = vsel %vm6268_vm2, %v280_v47, %v284_v30  ;;  %v2063_v58 = vor.u32 %v2062_v49, %v2059_v44  ;;  %v300_v62 = vshll.u32 %v157_v41, 16 }
  0x35   : > { %5552 = vmatprep.mubr.msk.bf16.mxu0 %vm649_vm3, %v4971_v46  ;;  %v290_v56 = vrot.slane %v289_v48, 4  ;;  %v2072_v63 = vrot.slane %v2070_v53, 4  ;;  %v2078_v0 = vrot.slane %v2076_v4, 5  ;;  %v306_v2 = vshll.u32 %v158_v50, 16  ;;  %v162_v53 = vld [vmem:[%s6238_s24 + $0x44] sm:$0x1] }
  0x36   : > { %v299_v1 = vrot.slane %v297_v54, 4  ;;  %v2064_v7 = vrot.slane %v2063_v58, 4  ;;  %v302_v8 = vrot.slane %v300_v62, 5  ;;  %v310_v9 = vshrl.u32 %v158_v50, 16  ;;  %v6414_v62 = vld [vmem:[%s6238_s24 + $0x48] sm:$0xf] }
  0x37   : > { %v295_v6 = vsel %vm6268_vm2, %v290_v56, %v294_v43  ;;  %v2073_v12 = vor.u32 %v2072_v63, %v2068_v51  ;;  %v308_v17 = vrot.slane %v306_v2, 5  ;;  %v316_v18 = vshll.u32 %v159_v60, 16 }
  0x38   : > { %v4760_v11 = vcombine.low %v285_v55, %v295_v6  ;;  %v2069_v21 = vsel %vm6268_vm2, %v2064_v7, %v2068_v51  ;;  %v303_v22 = vor.u32 %v302_v8, %v299_v1  ;;  %v312_v23 = vrot.slane %v310_v9, 4  ;;  %v6417_v6 = vld [vmem:[%s6238_s24 + $0x4c] sm:$0xf] }
  0x39   : > { %v2081_v24 = vshrl.u32 %v6377_v3, 16  ;;  %v2074_v27 = vrot.slane %v2073_v12, 4  ;;  %v318_v5 = vrot.slane %v316_v18, 5  ;;  %v2084_v30 = vshll.u32 %v6377_v3, 16  ;;  %v6423_v18 = vld [vmem:[%s6238_s24 + $0x50] sm:$0x1] }
  0x3a   : > { %5409 = vmatmul.mubr.msk.bf16.gmra.mrb[4].mxu1 %vm649_vm3, %v4760_v11  ;;  %v2090_v33 = vshll.u32 %v6382_v10, 16  ;;  %v304_v34 = vrot.slane %v303_v22, 4  ;;  %v313_v35 = vor.u32 %v312_v23, %v308_v17  ;;  %v2094_v37 = vshrl.u32 %v6382_v10, 16 }
  0x3b   : > { %v2083_v36 = vrot.slane %v2081_v24, 4  ;;  %v2079_v41 = vsel %vm6268_vm2, %v2074_v27, %v2078_v0  ;;  %v2086_v42 = vrot.slane %v2084_v30, 5  ;;  %v2100_v44 = vshll.u32 %v6385_v19, 16  ;;  %v6431_v30 = vld [vmem:[%s6238_s24 + $0x48] sm:$0xf] }
  0x3c   : > { %v2092_v43 = vrot.slane %v2090_v33, 5  ;;  %v4972_v46 = vcombine.low %v2069_v21, %v2079_v41  ;;  %v309_v47 = vsel %vm6268_vm2, %v304_v34, %v308_v17  ;;  %v314_v48 = vrot.slane %v313_v35, 4 }
  0x3d   : > { %v2096_v49 = vrot.slane %v2094_v37, 4  ;;  %v2087_v50 = vor.u32 %v2086_v42, %v2083_v36  ;;  %v2102_v51 = vrot.slane %v2100_v44, 5  ;;  %v321_v4 = vshrl.u32 %v6395_v40, 16  ;;  %v6434_v37 = vld [vmem:[%s6238_s24 + $0x4c] sm:$0xf] }
  0x3e   : > { %v324_v54 = vshll.u32 %v6395_v40, 16  ;;  %5553 = vmatmul.mubr.msk.bf16.gmra.mrb[4].mxu0 %vm649_vm3, %v4972_v46  ;;  %v319_v55 = vsel %vm6268_vm2, %v314_v48, %v318_v5  ;;  %v330_v58 = vshll.u32 %v6401_v45, 16  ;;  %v334_v60 = vshrl.u32 %v6401_v45, 16  ;;  %v165_v48 = vld [vmem:[%s6238_s24 + $0x50] sm:$0x1] }
  0x3f   : > { %v2097_v56 = vor.u32 %v2096_v49, %v2092_v43  ;;  %v4761_v63 = vcombine.low %v309_v47, %v319_v55  ;;  %v2088_v0 = vrot.slane %v2087_v50, 4  ;;  %v323_v1 = vrot.slane %v321_v4, 4  ;;  %v6448_v55 = vld [vmem:[%s6238_s24 + $0x54] sm:$0xf] }
  0x40   : > { %v326_v2 = vrot.slane %v324_v54, 5  ;;  %v332_v8 = vrot.slane %v330_v58, 5  ;;  %v336_v9 = vrot.slane %v334_v60, 4  ;;  %v340_v11 = vshll.u32 %v162_v53, 16 }
  0x41   : > { %v2098_v7 = vrot.slane %v2097_v56, 4  ;;  %5412 = vmatprep.mubr.msk.bf16.mxu1 %vm649_vm3, %v4761_v63  ;;  %v2093_v12 = vsel %vm6268_vm2, %v2088_v0, %v2092_v43  ;;  %v2105_v21 = vshrl.u32 %v6414_v62, 16  ;;  %v2108_v22 = vshll.u32 %v6414_v62, 16  ;;  %v6451_v0 = vld [vmem:[%s6238_s24 + $0x58] sm:$0xf] }
  0x42   : > { %v327_v17 = vor.u32 %v326_v2, %v323_v1  ;;  %v337_v24 = vor.u32 %v336_v9, %v332_v8  ;;  %v342_v27 = vrot.slane %v340_v11, 5  ;;  %v2114_v5 = vshll.u32 %v6417_v6, 16 }
  0x43   : > { %v2103_v23 = vsel %vm6268_vm2, %v2098_v7, %v2102_v51  ;;  %v2107_v35 = vrot.slane %v2105_v21, 4  ;;  %v2110_v36 = vrot.slane %v2108_v22, 5  ;;  %v2118_v43 = vshrl.u32 %v6417_v6, 16 }
  0x44   : > { %v4973_v33 = vcombine.low %v2093_v12, %v2103_v23  ;;  %v328_v34 = vrot.slane %v327_v17, 4  ;;  %v338_v41 = vrot.slane %v337_v24, 4  ;;  %v2116_v42 = vrot.slane %v2114_v5, 5  ;;  %v6458_v12 = vld [vmem:[%s6238_s24 + $0x5c] sm:$0x1] }
  0x45   : > { %v2124_v44 = vshll.u32 %v6423_v18, 16  ;;  %v2111_v47 = vor.u32 %v2110_v36, %v2107_v35  ;;  %v345_v49 = vshrl.u32 %v6431_v30, 16  ;;  %v348_v50 = vshll.u32 %v6431_v30, 16  ;;  %v6465_v36 = vld [vmem:[%s6238_s24 + $0x54] sm:$0xf] }
  0x46   : > { %5556 = vmatprep.mubr.msk.bf16.mxu0 %vm649_vm3, %v4973_v33  ;;  %v333_v46 = vsel %vm6268_vm2, %v328_v34, %v332_v8  ;;  %v343_v51 = vsel %vm6268_vm2, %v338_v41, %v342_v27  ;;  %v2120_v53 = vrot.slane %v2118_v43, 4  ;;  %v354_v54 = vshll.u32 %v6434_v37, 16 }
  0x47   : > { %v2126_v4 = vrot.slane %v2124_v44, 5  ;;  %v4762_v56 = vcombine.low %v333_v46, %v343_v51  ;;  %v2112_v58 = vrot.slane %v2111_v47, 4  ;;  %v347_v60 = vrot.slane %v345_v49, 4  ;;  %v6471_v46 = vld [vmem:[%s6238_s24 + $0x58] sm:$0xf] }
  0x48   : > { %v350_v63 = vrot.slane %v348_v50, 5  ;;  %v2121_v1 = vor.u32 %v2120_v53, %v2116_v42  ;;  %v356_v2 = vrot.slane %v354_v54, 5  ;;  %v358_v7 = vshrl.u32 %v6434_v37, 16  ;;  %v168_v47 = vld [vmem:[%s6238_s24 + $0x5c] sm:$0x1] }
  0x49   : > { %v364_v8 = vshll.u32 %v165_v48, 16  ;;  %5413 = vmatmul.mubr.msk.bf16.gmra.mrb[8].mxu1 %vm649_vm3, %v4762_v56  ;;  %v2117_v9 = vsel %vm6268_vm2, %v2112_v58, %v2116_v42  ;;  %v2129_v17 = vshrl.u32 %v6448_v55, 16  ;;  %v2132_v21 = vshll.u32 %v6448_v55, 16 }
  0x4a   : > { %v351_v11 = vor.u32 %v350_v63, %v347_v60  ;;  %v2122_v22 = vrot.slane %v2121_v1, 4  ;;  %v360_v23 = vrot.slane %v358_v7, 4  ;;  %v2138_v27 = vshll.u32 %v6451_v0, 16  ;;  %v6482_v7 = vld [vmem:[%s6238_s24 + $0x60] sm:$0xf] }
  0x4b   : > { %v366_v24 = vrot.slane %v364_v8, 5  ;;  %v2131_v33 = vrot.slane %v2129_v17, 4  ;;  %v2134_v34 = vrot.slane %v2132_v21, 5  ;;  %v2142_v35 = vshrl.u32 %v6451_v0, 16  ;;  %v6487_v17 = vld [vmem:[%s6238_s24 + $0x64] sm:$0xf] }
  0x4c   : > { %v352_v5 = vrot.slane %v351_v11, 4  ;;  %v2127_v41 = vsel %vm6268_vm2, %v2122_v22, %v2126_v4  ;;  %v361_v42 = vor.u32 %v360_v23, %v356_v2  ;;  %v2140_v43 = vrot.slane %v2138_v27, 5 }
  0x4d   : > { %v2148_v44 = vshll.u32 %v6458_v12, 16  ;;  %v4974_v48 = vcombine.low %v2117_v9, %v2127_v41  ;;  %v2135_v50 = vor.u32 %v2134_v34, %v2131_v33  ;;  %v2144_v51 = vrot.slane %v2142_v35, 4  ;;  %v6492_v35 = vld [vmem:[%s6238_s24 + $0x68] sm:$0x1] }
  0x4e   : > { %v357_v49 = vsel %vm6268_vm2, %v352_v5, %v356_v2  ;;  %v362_v53 = vrot.slane %v361_v42, 4  ;;  %v369_v56 = vshrl.u32 %v6465_v36, 16  ;;  %v372_v4 = vshll.u32 %v6465_v36, 16 }
  0x4f   : > { %v2150_v54 = vrot.slane %v2148_v44, 5  ;;  %5557 = vmatmul.mubr.msk.bf16.gmra.mrb[8].mxu0 %vm649_vm3, %v4974_v48  ;;  %v2136_v58 = vrot.slane %v2135_v50, 4  ;;  %v2145_v60 = vor.u32 %v2144_v51, %v2140_v43  ;;  %v378_v63 = vshll.u32 %v6471_v46, 16 }
  0x50   : > { %v382_v1 = vshrl.u32 %v6471_v46, 16  ;;  %v367_v2 = vsel %vm6268_vm2, %v362_v53, %v366_v24  ;;  %v371_v8 = vrot.slane %v369_v56, 4  ;;  %v374_v9 = vrot.slane %v372_v4, 5  ;;  %v6505_v53 = vld [vmem:[%s6238_s24 + $0x64] sm:$0xf] }
  0x51   : > { %v388_v11 = vshll.u32 %v168_v47, 16  ;;  %v4763_v21 = vcombine.low %v357_v49, %v367_v2  ;;  %v2141_v22 = vsel %vm6268_vm2, %v2136_v58, %v2140_v43  ;;  %v2146_v23 = vrot.slane %v2145_v60, 4  ;;  %v6502_v47 = vld [vmem:[%s6238_s24 + $0x60] sm:$0xf] }
  0x52   : > { %v380_v27 = vrot.slane %v378_v63, 5  ;;  %v375_v5 = vor.u32 %v374_v9, %v371_v8  ;;  %v384_v33 = vrot.slane %v382_v1, 4  ;;  %v2153_v24 = vshrl.u32 %v6482_v7, 16 }
  0x53   : > { %v390_v34 = vrot.slane %v388_v11, 5  ;;  %5416 = vmatprep.mubr.msk.bf16.mxu1 %vm649_vm3, %v4763_v21  ;;  %v2151_v41 = vsel %vm6268_vm2, %v2146_v23, %v2150_v54  ;;  %v2156_v42 = vshll.u32 %v6482_v7, 16  ;;  %v2162_v44 = vshll.u32 %v6487_v17, 16  ;;  %v171_v21 = vld [vmem:[%s6238_s24 + $0x68] sm:$0x1] }
  0x54   : > { %v2166_v43 = vshrl.u32 %v6487_v17, 16  ;;  %v4975_v48 = vcombine.low %v2141_v22, %v2151_v41  ;;  %v376_v49 = vrot.slane %v375_v5, 4  ;;  %v385_v50 = vor.u32 %v384_v33, %v380_v27 }
  0x55   : > { %v2155_v51 = vrot.slane %v2153_v24, 4  ;;  %v2158_v56 = vrot.slane %v2156_v42, 5  ;;  %v2164_v4 = vrot.slane %v2162_v44, 5  ;;  %v2172_v54 = vshll.u32 %v6492_v35, 16 }
  0x56   : > { %v2168_v58 = vrot.slane %v2166_v43, 4  ;;  %5560 = vmatprep.mubr.msk.bf16.mxu0 %vm649_vm3, %v4975_v48  ;;  %v381_v60 = vsel %vm6268_vm2, %v376_v49, %v380_v27  ;;  %v386_v63 = vrot.slane %v385_v50, 4  ;;  %v393_v1 = vshrl.u32 %v6502_v47, 16  ;;  %v6519_v27 = vld [vmem:[%s6238_s24 + $0x6c] sm:$0xf] }
  0x57   : > { %v396_v2 = vshll.u32 %v6502_v47, 16  ;;  %v2159_v8 = vor.u32 %v2158_v56, %v2155_v51  ;;  %v2174_v11 = vrot.slane %v2172_v54, 5  ;;  %v402_v22 = vshll.u32 %v6505_v53, 16 }
  0x58   : > { %v2169_v9 = vor.u32 %v2168_v58, %v2164_v4  ;;  %v391_v23 = vsel %vm6268_vm2, %v386_v63, %v390_v34  ;;  %v395_v5 = vrot.slane %v393_v1, 4  ;;  %v406_v24 = vshrl.u32 %v6505_v53, 16 }
  0x59   : > { %v398_v33 = vrot.slane %v396_v2, 5  ;;  %v4764_v41 = vcombine.low %v381_v60, %v391_v23  ;;  %v2160_v42 = vrot.slane %v2159_v8, 4  ;;  %v404_v43 = vrot.slane %v402_v22, 5  ;;  %v6535_v60 = vld [vmem:[%s6238_s24 + $0x70] sm:$0xf] }
  0x5a   : > { %v2170_v44 = vrot.slane %v2169_v9, 4  ;;  %v408_v49 = vrot.slane %v406_v24, 4  ;;  %v412_v50 = vshll.u32 %v171_v21, 16  ;;  %v5003_v34 = vrot.slane %v6250_v13, 9  ;;  %v174_v13 = vld [vmem:[%s6238_s24 + $0x74] sm:$0x1] }
  0x5b   : > { %v399_v48 = vor.u32 %v398_v33, %v395_v5  ;;  %5417 = vmatmul.mubr.msk.bf16.gmra.mrb[12].mxu1 %vm649_vm3, %v4764_v41  ;;  %v2165_v56 = vsel %vm6268_vm2, %v2160_v42, %v2164_v4  ;;  %v2692_v54 = vrot.slane %v6253_v15, 5  ;;  %v417_v63 = vshrl.u32 %v6519_v27, 16 }
  0x5c   : > { %v2175_v58 = vsel %vm6268_vm2, %v2170_v44, %v2174_v11  ;;  %v409_v8 = vor.u32 %v408_v49, %v404_v43  ;;  %v414_v9 = vrot.slane %v412_v50, 5  ;;  %v420_v4 = vshll.u32 %v6519_v27, 16  ;;  %v6543_v11 = vld [vmem:[%s6238_s24 + $0x78] sm:$0xf] }
  0x5d   : > { %v4976_v1 = vcombine.low %v2165_v56, %v2175_v58  ;;  %v400_v2 = vrot.slane %v399_v48, 4  ;;  %v2693_v21 = vsel %vm6523_vm6, %v5003_v34, %v2692_v54  ;;  %v2694_v22 = vrot.slane %v2692_v54, 4  ;;  %v6558_v56 = vld [vmem:[%s6238_s24 + $0x7c] sm:$0xf]  ;;  %v177_v58 = vld [vmem:[%s6238_s24 + $0x80] sm:$0x1] }
  0x5e   : > { %v419_v23 = vrot.slane %v417_v63, 4  ;;  %v410_v5 = vrot.slane %v409_v8, 4  ;;  %v426_v33 = vshll.u32 %v6535_v60, 16  ;;  %v430_v24 = vshrl.u32 %v6535_v60, 16 }
  0x5f   : > { %5561 = vmatmul.mubr.msk.bf16.gmra.mrb[12].mxu0 %vm649_vm3, %v4976_v1  ;;  %v405_v15 = vsel %vm6268_vm2, %v400_v2, %v404_v43  ;;  %v2696_v41 = vsel %vm6523_vm6, %v2694_v22, %v2695_v59  ;;  %v422_v42 = vrot.slane %v420_v4, 5  ;;  %v436_v44 = vshll.u32 %v174_v13, 16 }
  0x60   : > { %v5004_v48 = vrot.slane %v6278_v52, 9  ;;  %v415_v49 = vsel %vm6268_vm2, %v410_v5, %v414_v9  ;;  %v5023_v50 = vcombine.low %v2693_v21, %v2696_v41  ;;  %v428_v34 = vrot.slane %v426_v33, 5 }
  0x61   : > { %v432_v43 = vrot.slane %v430_v24, 4  ;;  %v4765_v54 = vcombine.low %v405_v15, %v415_v49  ;;  %v423_v63 = vor.u32 %v422_v42, %v419_v23  ;;  %v438_v1 = vrot.slane %v436_v44, 5  ;;  %v6004_v15 = vld [vmem:[%s8192_s1 + $0x68] sm:$0xff]   ;;  %v6583_v42 = vld [vmem:[%s6238_s24 + $0x84] sm:$0xf] }
  0x62   : > { %v2700_v16 = vsel %vm6523_vm6, %v5004_v48, %v2699_v20  ;;  %5584 = vmatprep.mubr.msk.bf16.mxu0 %vm649_vm3, %v5023_v50  ;;  %v2701_v59 = vrot.slane %v2699_v20, 4  ;;  %v441_v2 = vshrl.u32 %v6543_v11, 16  ;;  %v444_v8 = vshll.u32 %v6543_v11, 16  ;;  %v6586_v44 = vld [vmem:[%s6238_s24 + $0x88] sm:$0xf] }
  0x63   : > { %v433_v52 = vor.u32 %v432_v43, %v428_v34  ;;  %5420 = vmatprep.mubr.msk.bf16.mxu1 %vm649_vm3, %v4765_v54  ;;  %v424_v9 = vrot.slane %v423_v63, 4  ;;  %v450_v13 = vshll.u32 %v6558_v56, 16  ;;  %v454_v21 = vshrl.u32 %v6558_v56, 16  ;;  %v180_v63 = vld [vmem:[%s6238_s24 + $0x8c] sm:$0x1] }
  0x64   : > { %v460_v22 = vshll.u32 %v177_v58, 16  ;;  %v2703_v57 = vsel %vm6523_vm6, %v2701_v59, %v2702_v25  ;;  %v443_v20 = vrot.slane %v441_v2, 4  ;;  %v446_v4 = vrot.slane %v444_v8, 5 }
  0x65   : > { %v434_v23 = vrot.slane %v433_v52, 4  ;;  %v429_v5 = vsel %vm6268_vm2, %v424_v9, %v428_v34  ;;  %v5024_v33 = vcombine.low %v2700_v16, %v2703_v57  ;;  %v452_v24 = vrot.slane %v450_v13, 5 }
  0x66   : > { %v456_v41 = vrot.slane %v454_v21, 4  ;;  %v447_v25 = vor.u32 %v446_v4, %v443_v20  ;;  %v462_v48 = vrot.slane %v460_v22, 5  ;;  %v5005_v49 = vrot.slane %v6308_v26, 9  ;;  %v6615_v20 = vld [vmem:[%s6238_s24 + $0x90] sm:$0xf] }
  0x67   : > { %v439_v61 = vsel %vm6268_vm2, %v434_v23, %v438_v1  ;;  %5585 = vmatmul.mubr.msk.bf16.vlgmr.msra.gmra.mrb[0].mxu0 %vm649_vm3, %v5024_v33  ;;  %v2706_v34 = vrot.slane %v6311_v32, 5  ;;  %v2709_v58 = vrot.slane %v6317_v38, 5  ;;  %v465_v16 = vshrl.u32 %v6583_v42, 16  ;;  %v6618_v4 = vld [vmem:[%s6238_s24 + $0x94] sm:$0xf] }
  0x68   : > { %v4766_v50 = vcombine.low %v429_v5, %v439_v61  ;;  %v457_v43 = vor.u32 %v456_v41, %v452_v24  ;;  %5617 = vmatpush3.bf16.msra.mxu0 %v6354_v29  ;;  %v448_v54 = vrot.slane %v447_v25, 4  ;;  %v468_v1 = vshll.u32 %v6583_v42, 16  ;;  %v6606_v29 = vld [vmem:[%s8192_s1 + $0x70] sm:$0xff]  }
  0x69   : > { %v474_v52 = vshll.u32 %v6586_v44, 16  ;;  %v2707_v32 = vsel %vm6523_vm6, %v5005_v49, %v2706_v34  ;;  %v2708_v59 = vrot.slane %v2706_v34, 4  ;;  %v478_v38 = vshrl.u32 %v6586_v44, 16  ;;  %5618 = vmatprep.subr.bf16.mxu0 %v6004_v15 }
  0x6a   : > { %5421 = vmatmul.mubr.msk.bf16.gmra.mrb[16].mxu1 %vm649_vm3, %v4766_v50  ;;  %v458_v26 = vrot.slane %v457_v43, 4  ;;  %v453_v2 = vsel %vm6268_vm2, %v448_v54, %v452_v24  ;;  %v467_v8 = vrot.slane %v465_v16, 4  ;;  %v470_v9 = vrot.slane %v468_v1, 5  ;;  %v183_v43 = vld [vmem:[%s6238_s24 + $0x98] sm:$0x1] }
  0x6b   : > { %v476_v13 = vrot.slane %v474_v52, 5  ;;  %v2710_v22 = vsel %vm6523_vm6, %v2708_v59, %v2709_v58  ;;  %v480_v23 = vrot.slane %v478_v38, 4  ;;  %v484_v57 = vshll.u32 %v180_v63, 16 }
  0x6c   : > { %v463_v21 = vsel %vm6268_vm2, %v458_v26, %v462_v48  ;;  %v5025_v33 = vcombine.low %v2707_v32, %v2710_v22  ;;  %v471_v41 = vor.u32 %v470_v9, %v467_v8  ;;  %v5006_v24 = vrot.slane %v6343_v14, 9  ;;  %5619 = vmatpush3.bf16.msra.mxu0 %v6004_v15  ;;  %v6643_v8 = vld [vmem:[%s6238_s24 + $0xa0] sm:$0xf] }
  0x6d   : > { %v4767_v5 = vcombine.low %v453_v2, %v463_v21  ;;  %v481_v61 = vor.u32 %v480_v23, %v476_v13  ;;  %v486_v25 = vrot.slane %v484_v57, 5  ;;  %v2713_v48 = vrot.slane %v6349_v28, 5  ;;  %5652 = vmatprep.subr.bf16.mxu0 %v6606_v29  ;;  %v6640_v2 = vld [vmem:[%s6238_s24 + $0x9c] sm:$0xf] }
  0x6e   : > { %v2716_v49 = vrot.slane %v6361_v39, 5  ;;  %5588 = vmatprep.mubr.msk.bf16.mxu0 %vm649_vm3, %v5025_v33  ;;  %v472_v50 = vrot.slane %v471_v41, 4  ;;  %v489_v34 = vshrl.u32 %v6615_v20, 16  ;;  %v492_v14 = vshll.u32 %v6615_v20, 16 }
  0x6f   : > { %5424 = vmatprep.mubr.msk.bf16.mxu1 %vm649_vm3, %v4767_v5  ;;  %v498_v15 = vshll.u32 %v6618_v4, 16  ;;  %v482_v58 = vrot.slane %v481_v61, 4  ;;  %v2714_v28 = vsel %vm6523_vm6, %v5006_v24, %v2713_v48  ;;  %v2715_v39 = vrot.slane %v2713_v48, 4  ;;  %v186_v24 = vld [vmem:[%s6238_s24 + $0xa4] sm:$0x1] }
  0x70   : > { %v502_v54 = vshrl.u32 %v6618_v4, 16  ;;  %v477_v63 = vsel %vm6268_vm2, %v472_v50, %v476_v13  ;;  %v491_v16 = vrot.slane %v489_v34, 4  ;;  %v494_v1 = vrot.slane %v492_v14, 5 }
  0x71   : > { %v500_v52 = vrot.slane %v498_v15, 5  ;;  %v487_v26 = vsel %vm6268_vm2, %v482_v58, %v486_v25  ;;  %v2717_v32 = vsel %vm6523_vm6, %v2715_v39, %v2716_v49  ;;  %v508_v38 = vshll.u32 %v183_v43, 16 }
  0x72   : > { %v504_v59 = vrot.slane %v502_v54, 4  ;;  %v4768_v9 = vcombine.low %v477_v63, %v487_v26  ;;  %v5026_v21 = vcombine.low %v2714_v28, %v2717_v32  ;;  %v495_v22 = vor.u32 %v494_v1, %v491_v16  ;;  %v6664_v54 = vld [vmem:[%s6238_s24 + $0xa8] sm:$0xf]  ;;  %v6667_v63 = vld [vmem:[%s6238_s24 + $0xac] sm:$0xf] }
  0x73   : > { %v5007_v13 = vrot.slane %v6377_v3, 9  ;;  %v510_v57 = vrot.slane %v508_v38, 5  ;;  %v2720_v5 = vrot.slane %v6382_v10, 5  ;;  %v2723_v33 = vrot.slane %v6385_v19, 5 }
  0x74   : > { %v505_v23 = vor.u32 %v504_v59, %v500_v52  ;;  %5425 = vmatmul.mubr.msk.bf16.gmra.mrb[20].mxu1 %vm649_vm3, %v4768_v9  ;;  %5589 = vmatmul.mubr.msk.bf16.gmra.mrb[4].mxu0 %vm649_vm3, %v5026_v21  ;;  %v496_v41 = vrot.slane %v495_v22, 4  ;;  %v513_v61 = vshrl.u32 %v6640_v2, 16  ;;  %v516_v25 = vshll.u32 %v6640_v2, 16  ;;  %v189_v22 = vld [vmem:[%s6238_s24 + $0xb0] sm:$0x1] }
  0x75   : > { %v522_v3 = vshll.u32 %v6643_v8, 16  ;;  %v2721_v10 = vsel %vm6523_vm6, %v5007_v13, %v2720_v5  ;;  %v2722_v49 = vrot.slane %v2720_v5, 4  ;;  %v526_v19 = vshrl.u32 %v6643_v8, 16 }
  0x76   : > { %v506_v48 = vrot.slane %v505_v23, 4  ;;  %v501_v50 = vsel %vm6268_vm2, %v496_v41, %v500_v52  ;;  %v515_v43 = vrot.slane %v513_v61, 4  ;;  %v518_v34 = vrot.slane %v516_v25, 5 }
  0x77   : > { %v524_v14 = vrot.slane %v522_v3, 5  ;;  %v2724_v58 = vsel %vm6523_vm6, %v2722_v49, %v2723_v33  ;;  %v528_v28 = vrot.slane %v526_v19, 4  ;;  %v532_v39 = vshll.u32 %v186_v24, 16  ;;  %v6682_v33 = vld [vmem:[%s6238_s24 + $0xb4] sm:$0xf] }
  0x78   : > { %v511_v15 = vsel %vm6268_vm2, %v506_v48, %v510_v57  ;;  %v5027_v1 = vcombine.low %v2721_v10, %v2724_v58  ;;  %v519_v26 = vor.u32 %v518_v34, %v515_v43  ;;  %v5008_v52 = vrot.slane %v6414_v62, 9  ;;  %v6691_v19 = vld [vmem:[%s6238_s24 + $0xb8] sm:$0xf] }
  0x79   : > { %v4769_v16 = vcombine.low %v501_v50, %v511_v15  ;;  %v529_v32 = vor.u32 %v528_v28, %v524_v14  ;;  %v534_v59 = vrot.slane %v532_v39, 5  ;;  %v2727_v38 = vrot.slane %v6417_v6, 5  ;;  %8216 = vst [vmem:[#allocation2_spill] sm:$0xff] %v6691_v19 }
  0x7a   : > { %v2730_v9 = vrot.slane %v6423_v18, 5  ;;  %5592 = vmatprep.mubr.msk.bf16.mxu0 %vm649_vm3, %v5027_v1  ;;  %v520_v21 = vrot.slane %v519_v26, 4  ;;  %v537_v13 = vshrl.u32 %v6664_v54, 16  ;;  %v540_v23 = vshll.u32 %v6664_v54, 16  ;;  %v192_v1 = vld [vmem:[%s6238_s24 + $0xbc] sm:$0x1] }
  0x7b   : > { %5428 = vmatprep.mubr.msk.bf16.mxu1 %vm649_vm3, %v4769_v16  ;;  %v546_v62 = vshll.u32 %v6667_v63, 16  ;;  %v530_v57 = vrot.slane %v529_v32, 4  ;;  %v2728_v5 = vsel %vm6523_vm6, %v5008_v52, %v2727_v38  ;;  %v2729_v6 = vrot.slane %v2727_v38, 4  ;;  %v4903_v38 = vld [vmem:[%s6238_s24 + $0x6c] sm:$0xf] }
  0x7c   : > { %v550_v18 = vshrl.u32 %v6667_v63, 16  ;;  %v525_v41 = vsel %vm6268_vm2, %v520_v21, %v524_v14  ;;  %v539_v24 = vrot.slane %v537_v13, 4  ;;  %v542_v61 = vrot.slane %v540_v23, 5  ;;  %v4904_v23 = vld [vmem:[%s6238_s24 + $0x70] sm:$0xf] }
  0x7d   : > { %v548_v25 = vrot.slane %v546_v62, 5  ;;  %v535_v3 = vsel %vm6268_vm2, %v530_v57, %v534_v59  ;;  %v2731_v48 = vsel %vm6523_vm6, %v2729_v6, %v2730_v9  ;;  %v556_v49 = vshll.u32 %v189_v22, 16 }
  0x7e   : > { %v552_v10 = vrot.slane %v550_v18, 4  ;;  %v4770_v50 = vcombine.low %v525_v41, %v535_v3  ;;  %v5028_v43 = vcombine.low %v2728_v5, %v2731_v48  ;;  %v543_v34 = vor.u32 %v542_v61, %v539_v24  ;;  %v4905_v18 = vld [vmem:[%s6238_s24 + $0x74] sm:$0x1] }
  0x7f   : > { %v5009_v15 = vrot.slane %v6448_v55, 9  ;;  %v558_v58 = vrot.slane %v556_v49, 5  ;;  %v2734_v28 = vrot.slane %v6451_v0, 5  ;;  %v2737_v39 = vrot.slane %v6458_v12, 5 }
  0x80   : > { %v553_v14 = vor.u32 %v552_v10, %v548_v25  ;;  %5429 = vmatmul.mubr.msk.bf16.gmra.mrb[24].mxu1 %vm649_vm3, %v4770_v50  ;;  %5593 = vmatmul.mubr.msk.bf16.gmra.mrb[8].mxu0 %vm649_vm3, %v5028_v43  ;;  %v544_v16 = vrot.slane %v543_v34, 4  ;;  %v561_v26 = vshrl.u32 %v6682_v33, 16  ;;  %v564_v52 = vshll.u32 %v6682_v33, 16 }
  0x81   : > { %v570_v55 = vshll.u32 %v6691_v19, 16  ;;  %v2735_v0 = vsel %vm6523_vm6, %v5009_v15, %v2734_v28  ;;  %v2736_v59 = vrot.slane %v2734_v28, 4  ;;  %v574_v12 = vshrl.u32 %v6691_v19, 16 }
  0x82   : > { %v554_v32 = vrot.slane %v553_v14, 4  ;;  %v549_v9 = vsel %vm6268_vm2, %v544_v16, %v548_v25  ;;  %v563_v21 = vrot.slane %v561_v26, 4  ;;  %v566_v22 = vrot.slane %v564_v52, 5  ;;  %v6733_v26 = vld [vmem:[%s6238_s24 + $0x4] sm:$0xf] }
  0x83   : > { %v572_v13 = vrot.slane %v570_v55, 5  ;;  %v2738_v57 = vsel %vm6523_vm6, %v2736_v59, %v2737_v39  ;;  %v576_v5 = vrot.slane %v574_v12, 4  ;;  %v580_v6 = vshll.u32 %v192_v1, 16  ;;  %v6730_v1 = vld [vmem:[%s6238_s24] sm:$0xf] }
  0x84   : > { %v559_v62 = vsel %vm6268_vm2, %v554_v32, %v558_v58  ;;  %v5029_v24 = vcombine.low %v2735_v0, %v2738_v57  ;;  %v567_v61 = vor.u32 %v566_v22, %v563_v21  ;;  %v5010_v3 = vrot.slane %v6482_v7, 9  ;;  %v4906_v55 = vld [vmem:[%s6238_s24 + $0x78] sm:$0xf]  ;;  %v4907_v32 = vld [vmem:[%s6238_s24 + $0x7c] sm:$0xf] }
  0x85   : > { %v4771_v41 = vcombine.low %v549_v9, %v559_v62  ;;  %v577_v48 = vor.u32 %v576_v5, %v572_v13  ;;  %v582_v25 = vrot.slane %v580_v6, 5  ;;  %v2741_v10 = vrot.slane %v6487_v17, 5  ;;  %v4908_v0 = vld [vmem:[%s6238_s24 + $0x80] sm:$0x1]  ;;  %v4909_v9 = vld [vmem:[%s6238_s24 + $0x84] sm:$0xf] }
  0x86   : > { %v2744_v49 = vrot.slane %v6492_v35, 5  ;;  %5596 = vmatprep.mubr.msk.bf16.mxu0 %vm649_vm3, %v5029_v24  ;;  %v568_v50 = vrot.slane %v567_v61, 4  ;;  %v5011_v43 = vrot.slane %v4903_v38, 9  ;;  %v2748_v34 = vrot.slane %v4904_v23, 5  ;;  %v4910_v21 = vld [vmem:[%s6238_s24 + $0x88] sm:$0xf] }
  0x87   : > { %5432 = vmatprep.mubr.msk.bf16.mxu1 %vm649_vm3, %v4771_v41  ;;  %v2751_v15 = vrot.slane %v4905_v18, 5  ;;  %v578_v7 = vrot.slane %v577_v48, 4  ;;  %v2742_v14 = vsel %vm6523_vm6, %v5010_v3, %v2741_v10  ;;  %v2743_v17 = vrot.slane %v2741_v10, 4  ;;  %v4912_v18 = vld [vmem:[%s6238_s24 + $0x90] sm:$0xf] }
  0x88   : > { %v573_v35 = vsel %vm6268_vm2, %v568_v50, %v572_v13  ;;  %v2749_v58 = vsel %vm6523_vm6, %v5011_v43, %v2748_v34  ;;  %v2750_v28 = vrot.slane %v2748_v34, 4  ;;  %v4791_v52 = vcombine.low %v6730_v1, %v6733_v26  ;;  %v4911_v13 = vld [vmem:[%s6238_s24 + $0x8c] sm:$0x1]  ;;  %v4913_v41 = vld [vmem:[%s6238_s24 + $0x94] sm:$0xf] }
  0x89   : > { %v583_v39 = vsel %vm6268_vm2, %v578_v7, %v582_v25  ;;  %v2745_v16 = vsel %vm6523_vm6, %v2743_v17, %v2744_v49  ;;  %v5012_v23 = vrot.slane %v4906_v55, 9  ;;  %v2755_v62 = vrot.slane %v4907_v32, 5  ;;  %v4914_v48 = vld [vmem:[%s6238_s24 + $0x98] sm:$0x1]  ;;  %v4916_v25 = vld [vmem:[%s6238_s24 + $0xa0] sm:$0xf] }
  0x8a   : > { %v4772_v59 = vcombine.low %v573_v35, %v583_v39  ;;  %v5030_v12 = vcombine.low %v2742_v14, %v2745_v16  ;;  %v2752_v38 = vsel %vm6523_vm6, %v2750_v28, %v2751_v15  ;;  %v2758_v57 = vrot.slane %v4908_v0, 5  ;;  %v6756_v10 = vld [vmem:[%s6238_s24 + $0xc] sm:$0xf]  ;;  %v6759_v49 = vld [vmem:[%s6238_s24 + $0x10] sm:$0xf] }
  0x8b   : > { %v5031_v22 = vcombine.low %v2749_v58, %v2752_v38  ;;  %v5013_v5 = vrot.slane %v4909_v9, 9  ;;  %v2762_v6 = vrot.slane %v4910_v21, 5  ;;  %v2756_v24 = vsel %vm6523_vm6, %v5012_v23, %v2755_v62  ;;  %v4915_v15 = vld [vmem:[%s6238_s24 + $0x9c] sm:$0xf]  ;;  %v4917_v7 = vld [vmem:[%s6238_s24 + $0xa4] sm:$0x1] }
  0x8c   : > { %5433 = vmatmul.mubr.msk.bf16.gmra.mrb[28].mxu1 %vm649_vm3, %v4772_v59  ;;  %5597 = vmatmul.mubr.msk.bf16.gmra.mrb[12].mxu0 %vm649_vm3, %v5030_v12  ;;  %v2757_v61 = vrot.slane %v2755_v62, 4  ;;  %v2765_v3 = vrot.slane %v4911_v13, 5  ;;  %v4792_v50 = vcombine.low %v6756_v10, %v6759_v49  ;;  %v6770_v17 = vld [vmem:[%s6238_s24 + $0x18] sm:$0xf]  ;;  %v6773_v35 = vld [vmem:[%s6238_s24 + $0x1c] sm:$0xf] }
  0x8d   : > { %5440 = vmatprep.mubr.msk.bf16.mxu1 %vm649_vm3, %v4791_v52  ;;  %5600 = vmatprep.mubr.msk.bf16.mxu0 %vm649_vm3, %v5031_v22  ;;  %v2763_v43 = vsel %vm6523_vm6, %v5013_v5, %v2762_v6  ;;  %v2764_v34 = vrot.slane %v2762_v6, 4  ;;  %v4793_v58 = vcombine.low %v6770_v17, %v6773_v35  ;;  %v5014_v28 = vrot.slane %v4912_v18, 9  ;;  %v4919_v9 = vld [vmem:[%s6238_s24 + $0xac] sm:$0xf]  ;;  %v4922_v13 = vld [vmem:[%s6238_s24 + $0xb8] sm:$0xf] }
  0x8e   : > { %v2759_v14 = vsel %vm6523_vm6, %v2757_v61, %v2758_v57  ;;  %v2769_v39 = vrot.slane %v4913_v41, 5  ;;  %v2772_v55 = vrot.slane %v4914_v48, 5  ;;  %v2776_v32 = vrot.slane %v4916_v25, 5  ;;  %v6013_v21 = vld [vmem:[%s8192_s1 + $0x28] sm:$0xff]   ;;  %v6069_v23 = vld [vmem:[%s8192_s1 + $0x20] sm:$0xff]  }
  0x8f   : > { %v5032_v16 = vcombine.low %v2756_v24, %v2759_v14  ;;  %v2766_v52 = vsel %vm6523_vm6, %v2764_v34, %v2765_v3  ;;  %v5015_v12 = vrot.slane %v4915_v15, 9  ;;  %v2779_v38 = vrot.slane %v4917_v7, 5  ;;  %v4918_v41 = vld [vmem:[%s6238_s24 + $0xa8] sm:$0xf]  ;;  %v4920_v24 = vld [vmem:[%s6238_s24 + $0xb0] sm:$0x1] }
  0x90   : > { %v5033_v0 = vcombine.low %v2763_v43, %v2766_v52  ;;  %v2771_v59 = vrot.slane %v2769_v39, 4  ;;  %v2778_v22 = vrot.slane %v2776_v32, 4  ;;  %v2770_v62 = vsel %vm6523_vm6, %v5014_v28, %v2769_v39  ;;  %v6804_v3 = vld [vmem:[%s8192_s1 + $0x30] sm:$0xff]   ;;  %v4923_v25 = vld [vmem:[%s6238_s24 + $0xbc] sm:$0x1] }
  0x91   : > { %v2783_v5 = vrot.slane %v4919_v9, 5  ;;  %v2777_v6 = vsel %vm6523_vm6, %v5015_v12, %v2776_v32  ;;  %v2790_v61 = vrot.slane %v4922_v13, 5  ;;  %v4921_v48 = vld [vmem:[%s6238_s24 + $0xb4] sm:$0xf]  ;;  %v6812_v43 = vld [vmem:[%s6238_s24 + $0x28] sm:$0xf] }
  0x92   : > { %v2773_v57 = vsel %vm6523_vm6, %v2771_v59, %v2772_v55  ;;  %v2780_v18 = vsel %vm6523_vm6, %v2778_v22, %v2779_v38  ;;  %v6817_v7 = vld [vmem:[%s6238_s24 + $0x30] sm:$0xf]  ;;  %v6820_v14 = vld [vmem:[%s6238_s24 + $0x34] sm:$0xf]  ;;  %v5016_v39 = vrot.slane %v4918_v41, 9  ;;  %v2786_v52 = vrot.slane %v4920_v24, 5 }
  0x93   : > { %v5034_v15 = vcombine.low %v2770_v62, %v2773_v57  ;;  %v5035_v28 = vcombine.low %v2777_v6, %v2780_v18  ;;  %v5017_v55 = vrot.slane %v4921_v48, 9  ;;  %v2792_v32 = vrot.slane %v2790_v61, 4  ;;  %v4925_v59 = vld [vmem:[%s6238_s24 + $0xc4] sm:$0xf]  ;;  %v4924_v13 = vld [vmem:[%s6238_s24 + $0xc0] sm:$0xf] }
  0x94   : > { %5441 = vmatmul.mubr.msk.bf16.vlgmr.msra.gmra.mrb[0].mxu1 %vm649_vm3, %v4792_v50  ;;  %5601 = vmatmul.mubr.msk.bf16.gmra.mrb[16].mxu0 %vm649_vm3, %v5032_v16  ;;  %v6809_v50 = vld [vmem:[%s6238_s24 + $0x24] sm:$0xf]  ;;  %v2785_v16 = vrot.slane %v2783_v5, 4  ;;  %v2784_v12 = vsel %vm6523_vm6, %v5016_v39, %v2783_v5  ;;  %v2797_v9 = vrot.slane %v4925_v59, 5  ;;  %v4796_v62 = vcombine.low %v6395_v40, %v6401_v45 }
  0x95   : > { %5473 = vmatpush3.bf16.msra.mxu1 %v6069_v23  ;;  %5444 = vmatprep.mubr.msk.bf16.mxu1 %vm649_vm3, %v4793_v58  ;;  %v4794_v34 = vcombine.low %v6809_v50, %v6812_v43  ;;  %v4795_v58 = vcombine.low %v6817_v7, %v6820_v14  ;;  %v4926_v23 = vld [vmem:[%s6238_s24 + $0xc8] sm:$0x1]  ;;  %v4797_v5 = vcombine.low %v6431_v30, %v6434_v37  ;;  %v5018_v18 = vrot.slane %v4924_v13, 9  ;;  %v6853_v30 = vld [vmem:[%s6238_s24 + $0x18] sm:$0xf] }
  0x96   : > { %5604 = vmatprep.mubr.msk.bf16.mxu0 %vm649_vm3, %v5033_v0  ;;  %5474 = vmatprep.subr.bf16.mxu1 %v6013_v21  ;;  %v2793_v0 = vrot.slane %v4923_v25, 5  ;;  %v2787_v38 = vsel %vm6523_vm6, %v2785_v16, %v2786_v52  ;;  %v2799_v41 = vrot.slane %v2797_v9, 4  ;;  %v2800_v24 = vrot.slane %v4926_v23, 5  ;;  %v6856_v37 = vld [vmem:[%s6238_s24 + $0x1c] sm:$0xf]  ;;  %v6911_v52 = vld [vmem:[%s8192_s1 + $0x80] sm:$0xff]  }
  0x97   : > { %v5036_v57 = vcombine.low %v2784_v12, %v2787_v38  ;;  %v2798_v40 = vsel %vm6523_vm6, %v5018_v18, %v2797_v9  ;;  %v4799_v25 = vcombine.low %v6502_v47, %v6505_v53  ;;  %v6878_v47 = vld [vmem:[%s6238_s24 + $0x34] sm:$0xf]  ;;  %v4800_v53 = vcombine.low %v6519_v27, %v6535_v60  ;;  %v6032_v16 = vld [vmem:[%s8192_s1 + $0x78] sm:$0xff]   ;;  %v6899_v60 = vld [vmem:[%s6238_s24 + $0x40] sm:$0xf] }
  0x98   : > { %v2794_v22 = vsel %vm6523_vm6, %v2792_v32, %v2793_v0  ;;  %v2801_v45 = vsel %vm6523_vm6, %v2799_v41, %v2800_v24  ;;  %v6896_v27 = vld [vmem:[%s6238_s24 + $0x3c] sm:$0xf]  ;;  %v1188_v32 = vrot.slane %v6759_v49, 5  ;;  %v4802_v0 = vcombine.low %v6583_v42, %v6586_v44  ;;  %v6923_v12 = vld [vmem:[%s6238_s24 + $0x14] sm:$0x1] }
  0x99   : > { %5475 = vmatpush3.bf16.msra.mxu1 %v6013_v21  ;;  %v2791_v21 = vsel %vm6523_vm6, %v5017_v55, %v2790_v61  ;;  %v4798_v61 = vcombine.low %v6465_v36, %v6471_v46  ;;  %v5038_v48 = vcombine.low %v2798_v40, %v2801_v45  ;;  %v6872_v36 = vld [vmem:[%s6238_s24 + $0x28] sm:$0xf]  ;;  %v6875_v46 = vld [vmem:[%s6238_s24 + $0x30] sm:$0xf]  ;;  %v5112_v59 = vcombine.low %v6896_v27, %v6899_v60  ;;  %v6932_v13 = vld [vmem:[%s6238_s24 + $0x54] sm:$0xf] }
  0x9a   : > { %5508 = vmatprep.subr.bf16.mxu1 %v6804_v3  ;;  %v5037_v6 = vcombine.low %v2791_v21, %v2794_v22  ;;  %v5111_v39 = vcombine.low %v6875_v46, %v6878_v47  ;;  %v1191_v38 = vrot.slane %v6923_v12, 5  ;;  %v3496_v9 = vshrl.u32 %v6853_v30, 16  ;;  %v6947_v18 = vld [vmem:[%s6238_s24 + $0x60] sm:$0xf]  ;;  %v6955_v45 = vld [vmem:[%s6238_s24 + $0x64] sm:$0xf] }
  0x9b   : > { %v4803_v21 = vcombine.low %v6615_v20, %v6618_v4  ;;  %v3499_v42 = vshll.u32 %v6853_v30, 16  ;;  %v1190_v40 = vrot.slane %v1188_v32, 4  ;;  %v7002_v24 = vld [vmem:[%s6238_s24 + $0x88] sm:$0xf]  ;;  %v1202_v4 = vrot.slane %v6812_v43, 5 }
  0x9c   : > { %5445 = vmatmul.mubr.msk.bf16.gmra.mrb[4].mxu1 %vm649_vm3, %v4794_v34  ;;  %5605 = vmatmul.mubr.msk.bf16.gmra.mrb[20].mxu0 %vm649_vm3, %v5034_v15  ;;  %v5109_v34 = vcombine.low %v6853_v30, %v6856_v37  ;;  %v6869_v15 = vld [vmem:[%s6238_s24 + $0x24] sm:$0xf]  ;;  %8221 = vst [vmem:[#allocation7_spill] sm:$0xff] %v7002_v24  ;;  %v1209_v49 = vrot.slane %v6820_v14, 5  ;;  %v6076_v12 = vld [vmem:[%s6238_s24 + $0x20] sm:$0x1] }
  0x9d   : > { %5448 = vmatprep.mubr.msk.bf16.mxu1 %vm649_vm3, %v4795_v58  ;;  %5608 = vmatprep.mubr.msk.bf16.mxu0 %vm649_vm3, %v5035_v28  ;;  %v5110_v58 = vcombine.low %v6869_v15, %v6872_v36  ;;  %v4801_v28 = vcombine.low %v6543_v11, %v6558_v56  ;;  %v6903_v11 = vld [vmem:[%s6238_s24 + $0x48] sm:$0xf]  ;;  %v6906_v56 = vld [vmem:[%s6238_s24 + $0x4c] sm:$0xf]  ;;  %v7159_v14 = vld [vmem:[%s6238_s24 + $0xd0] sm:$0xf] }
  0x9e   : > { %v5113_v22 = vcombine.low %v6903_v11, %v6906_v56  ;;  %v3501_v23 = vrot.slane %v3499_v42, 5 }
  0xa4   : > { %5449 = vmatmul.mubr.msk.bf16.gmra.mrb[8].mxu1 %vm649_vm3, %v4796_v62  ;;  %5609 = vmatmul.mubr.msk.bf16.gmra.mrb[24].mxu0 %vm649_vm3, %v5036_v57  ;;  %v6939_v57 = vld [vmem:[%s6238_s24 + $0x58] sm:$0xf] }
  0xa5   : > { %5452 = vmatprep.mubr.msk.bf16.mxu1 %vm649_vm3, %v4797_v5  ;;  %5612 = vmatprep.mubr.msk.bf16.mxu0 %vm649_vm3, %v5037_v6  ;;  %v1195_v6 = vrot.slane %v6773_v35, 5 }
  0xac   : > { %5453 = vmatmul.mubr.msk.bf16.gmra.mrb[12].mxu1 %vm649_vm3, %v4798_v61  ;;  %5613 = vmatmul.mubr.msk.bf16.gmra.mrb[28].mxu0 %vm649_vm3, %v5038_v48  ;;  %v1181_v61 = vrot.slane %v6733_v26, 5  ;;  %v5114_v26 = vcombine.low %v6932_v13, %v6939_v57 }
  0xad   : > { %5456 = vmatprep.mubr.msk.bf16.mxu1 %vm649_vm3, %v4799_v25  ;;  %5620 = vmatprep.mubr.msk.bf16.mxu0 %vm649_vm3, %v5109_v34  ;;  %v4825_v34 = vrot.slane %v6730_v1, 9 }
  0xae   : > { %v1183_v25 = vrot.slane %v1181_v61, 4 }
  0xaf   : > { %v1182_v41 = vsel %vm6523_vm6, %v4825_v34, %v1181_v61  ;;  %v7040_v61 = vld [vmem:[%s6238_s24 + $0x90] sm:$0xf]  ;;  %v6078_v34 = vld [vmem:[%s6238_s24 + $0x40] sm:$0xf] }
  0xb0   : > { %8222 = vst [vmem:[#allocation8_spill] sm:$0xff] %v7040_v61  ;;  %v1216_v5 = vrot.slane %v6078_v34, 5  ;;  %v7094_v34 = vld [vmem:[%s6238_s24 + $0xb4] sm:$0xf] }
  0xb4   : > { %5457 = vmatmul.mubr.msk.bf16.gmra.mrb[16].mxu1 %vm649_vm3, %v4800_v53  ;;  %5621 = vmatmul.mubr.msk.bf16.vlgmr.msra.gmra.mrb[0].mxu0 %vm649_vm3, %v5110_v58  ;;  %v4804_v53 = vcombine.low %v6640_v2, %v6643_v8  ;;  %v6966_v58 = vld [vmem:[%s6238_s24 + $0x6c] sm:$0xf]  ;;  %v5115_v2 = vcombine.low %v6947_v18, %v6955_v45  ;;  %v7055_v8 = vld [vmem:[%s6238_s24 + $0xa0] sm:$0xf] }
  0xb5   : > { %5653 = vmatpush3.bf16.msra.mxu0 %v6606_v29  ;;  %5460 = vmatprep.mubr.msk.bf16.mxu1 %vm649_vm3, %v4801_v28  ;;  %v6914_v29 = vld [vmem:[%s6238_s24 + $0x8] sm:$0x1]  ;;  %8217 = vst [vmem:[#allocation3_spill] sm:$0xff] %v6966_v58  ;;  %v6986_v28 = vld [vmem:[%s6238_s24 + $0x7c] sm:$0xf] }
  0xb6   : > { %5624 = vmatprep.mubr.msk.bf16.mxu0 %vm649_vm3, %v5111_v39  ;;  %5654 = vmatprep.subr.bf16.mxu0 %v6032_v16  ;;  %v1184_v55 = vrot.slane %v6914_v29, 5  ;;  %8219 = vst [vmem:[#allocation5_spill] sm:$0xff] %v6986_v28  ;;  %v7036_v29 = vsel %vm6523_vm6, %v1190_v40, %v1191_v38  ;;  %v7050_v38 = vld [vmem:[%s6238_s24 + $0x9c] sm:$0xf] }
  0xb8   : > { %v1185_v35 = vsel %vm6523_vm6, %v1183_v25, %v1184_v55  ;;  %v7043_v25 = vld [vmem:[%s6238_s24 + $0x94] sm:$0xf] }
  0xb9   : > { %5655 = vmatpush3.bf16.msra.mxu0 %v6032_v16  ;;  %v4806_v16 = vcombine.low %v6682_v33, %v6691_v19  ;;  %8223 = vst [vmem:[#allocation9_spill] sm:$0xff] %v7043_v25  ;;  %v4845_v40 = vcombine.low %v1182_v41, %v1185_v35  ;;  %v4829_v41 = vrot.slane %v6817_v7, 9  ;;  %v1211_v35 = vrot.slane %v1209_v49, 4  ;;  %v7078_v7 = vld [vmem:[%s6238_s24 + $0xa8] sm:$0xf] }
  0xba   : > { %5688 = vmatprep.subr.bf16.mxu0 %v6911_v52 }
  0xbc   : > { %5461 = vmatmul.mubr.msk.bf16.gmra.mrb[20].mxu1 %vm649_vm3, %v4802_v0  ;;  %5625 = vmatmul.mubr.msk.bf16.gmra.mrb[4].mxu0 %vm649_vm3, %v5112_v59  ;;  %v6974_v0 = vld [vmem:[%s6238_s24 + $0x70] sm:$0xf]  ;;  %v4805_v59 = vcombine.low %v6664_v54, %v6667_v63  ;;  %v6993_v54 = vld [vmem:[%s6238_s24 + $0x84] sm:$0xf] }
  0xbd   : > { %5464 = vmatprep.mubr.msk.bf16.mxu1 %vm649_vm3, %v4803_v21  ;;  %5628 = vmatprep.mubr.msk.bf16.mxu0 %vm649_vm3, %v5113_v22  ;;  %v6983_v22 = vld [vmem:[%s6238_s24 + $0x78] sm:$0xf]  ;;  %8220 = vst [vmem:[#allocation6_spill] sm:$0xff] %v6993_v54  ;;  %v5116_v48 = vcombine.low %v6966_v58, %v6974_v0  ;;  %v4826_v21 = vrot.slane %v6756_v10, 9  ;;  %v8226_v30 = vcombine.low %v6993_v54, %v7002_v24  ;;  %v6091_v54 = vld [vmem:[%s6238_s24 + $0x68] sm:$0x1] }
  0xbe   : > { %8218 = vst [vmem:[#allocation4_spill] sm:$0xff] %v6983_v22  ;;  %v5117_v1 = vcombine.low %v6983_v22, %v6986_v28  ;;  %v6085_v10 = vld [vmem:[%s6238_s24 + $0x58] sm:$0xf]  ;;  %v6093_v24 = vld [vmem:[%s6238_s24 + $0x74] sm:$0x1] }
  0xbf   : > { %v7030_v43 = vsel %vm6523_vm6, %v4826_v21, %v1188_v32  ;;  %v4827_v32 = vrot.slane %v6770_v17, 9  ;;  %v6077_v21 = vld [vmem:[%s6238_s24 + $0x2c] sm:$0x1]  ;;  %v1247_v19 = vrot.slane %v6093_v24, 5 }
  0xc0   : > { %v1205_v55 = vrot.slane %v6077_v21, 5  ;;  %v6079_v21 = vld [vmem:[%s6238_s24 + $0x38] sm:$0x1]  ;;  %v8225_v58 = vcombine.low %v7030_v43, %v7036_v29  ;;  %v3529_v43 = vshll.u32 %v6872_v36, 16 }
  0xc1   : > { %v1212_v39 = vrot.slane %v6079_v21, 5  ;;  %v7068_v20 = vsel %vm6523_vm6, %v4827_v32, %v1195_v6 }
  0xc2   : > { %v7223_v28 = vrot.slane %v3529_v43, 5 }
  0xc4   : > { %5465 = vmatmul.mubr.msk.bf16.gmra.mrb[24].mxu1 %vm649_vm3, %v4804_v53  ;;  %5629 = vmatmul.mubr.msk.bf16.gmra.mrb[8].mxu0 %vm649_vm3, %v5114_v26  ;;  %v1197_v53 = vrot.slane %v1195_v6, 4  ;;  %v1198_v26 = vrot.slane %v6076_v12, 5  ;;  %v7105_v12 = vld [vmem:[%s6238_s24 + $0xb8] sm:$0xf] }
  0xc5   : > { %5468 = vmatprep.mubr.msk.bf16.mxu1 %vm649_vm3, %v4805_v59  ;;  %5632 = vmatprep.mubr.msk.bf16.mxu0 %vm649_vm3, %v5115_v2  ;;  %v4828_v59 = vrot.slane %v6809_v50, 9  ;;  %v1204_v2 = vrot.slane %v1202_v4, 4  ;;  %v6040_v50 = vld [vmem:[%s8192_s1 + $0x38] sm:$0xff]  }
  0xc6   : > { %v7072_v17 = vsel %vm6523_vm6, %v1197_v53, %v1198_v26  ;;  %v7091_v26 = vld [vmem:[%s6238_s24 + $0xac] sm:$0xf]  ;;  %v6081_v53 = vld [vmem:[%s6238_s24 + $0x44] sm:$0x1] }
  0xc7   : > { %v7082_v21 = vsel %vm6523_vm6, %v4828_v59, %v1202_v4  ;;  %v7086_v6 = vsel %vm6523_vm6, %v1204_v2, %v1205_v55  ;;  %v6080_v55 = vld [vmem:[%s6238_s24 + $0x3c] sm:$0xf]  ;;  %v1218_v2 = vrot.slane %v1216_v5, 4  ;;  %v1219_v32 = vrot.slane %v6081_v53, 5  ;;  %v6082_v53 = vld [vmem:[%s6238_s24 + $0x4c] sm:$0xf] }
  0xc8   : > { %v4830_v59 = vrot.slane %v6080_v55, 9  ;;  %v4847_v33 = vcombine.low %v7068_v20, %v7072_v17  ;;  %v1223_v55 = vrot.slane %v6082_v53, 5  ;;  %v6083_v53 = vld [vmem:[%s6238_s24 + $0x48] sm:$0xf]  ;;  %v1230_v17 = vrot.slane %v6085_v10, 5 }
  0xc9   : > { %v4831_v4 = vrot.slane %v6083_v53, 9  ;;  %v6084_v53 = vld [vmem:[%s6238_s24 + $0x50] sm:$0x1] }
  0xca   : > { %v7144_v20 = vsel %vm6523_vm6, %v4830_v59, %v1216_v5  ;;  %v1226_v62 = vrot.slane %v6084_v53, 5  ;;  %v6086_v5 = vld [vmem:[%s6238_s24 + $0x54] sm:$0xf]  ;;  %v3498_v53 = vrot.slane %v3496_v9, 4  ;;  %v6088_v9 = vld [vmem:[%s6238_s24 + $0x5c] sm:$0x1] }
  0xcb   : > { %v4832_v59 = vrot.slane %v6086_v5, 9  ;;  %v7174_v44 = vsel %vm6523_vm6, %v4831_v4, %v1223_v55  ;;  %v1233_v42 = vrot.slane %v6088_v9, 5  ;;  %v1232_v29 = vrot.slane %v1230_v17, 4 }
  0xcc   : > { %5469 = vmatmul.mubr.msk.bf16.gmra.mrb[28].mxu1 %vm649_vm3, %v4806_v16  ;;  %5633 = vmatmul.mubr.msk.bf16.gmra.mrb[12].mxu0 %vm649_vm3, %v5116_v48  ;;  %v7116_v48 = vsel %vm6523_vm6, %v4829_v41, %v1209_v49  ;;  %v7120_v16 = vsel %vm6523_vm6, %v1211_v35, %v1212_v39  ;;  %v7130_v49 = vld [vmem:[%s6238_s24 + $0xc0] sm:$0xf]  ;;  %v7133_v41 = vld [vmem:[%s6238_s24 + $0xc4] sm:$0xf]  ;;  %v7148_v39 = vsel %vm6523_vm6, %v1218_v2, %v1219_v32  ;;  %v7152_v35 = vld [vmem:[%s6238_s24 + $0xcc] sm:$0xf] }
  0xcd   : > { %5476 = vmatprep.mubr.msk.bf16.mxu1 %vm649_vm3, %v4845_v40  ;;  %5636 = vmatprep.mubr.msk.bf16.mxu0 %vm649_vm3, %v5117_v1  ;;  %v3505_v1 = vshll.u32 %v6856_v37, 16  ;;  %v1225_v40 = vrot.slane %v1223_v55, 4  ;;  %v6087_v32 = vld [vmem:[%s6238_s24 + $0x64] sm:$0xf]  ;;  %v7192_v55 = vld [vmem:[%s6238_s24 + $0x20] sm:$0x1] }
  0xce   : > { %v1237_v2 = vrot.slane %v6087_v32, 5  ;;  %v8224_v32 = vshrl.u32 %v6856_v37, 16  ;;  %8227 = vst [vmem:[#allocation10_spill] sm:$0xff] %v7192_v55  ;;  %v6089_v37 = vld [vmem:[%s6238_s24 + $0x70] sm:$0xf]  ;;  %v8229_v9 = vshll.u32 %v6869_v15, 16 }
  0xcf   : > { %v7176_v5 = vrot.slane %v3505_v1, 5  ;;  %v1244_v1 = vrot.slane %v6089_v37, 5  ;;  %v8230_v37 = vcombine.low %v7040_v61, %v7043_v25  ;;  %v6092_v61 = vld [vmem:[%s6238_s24 + $0x6c] sm:$0xf] }
  0xd0   : > { %v3511_v22 = vrot.slane %v8224_v32, 4  ;;  %v8228_v32 = vshrl.u32 %v6869_v15, 16  ;;  %v3525_v4 = vrot.slane %v8229_v9, 5  ;;  %v1239_v10 = vrot.slane %v1237_v2, 4 }
  0xd1   : > { %v3515_v9 = vshll.u32 %v7192_v55, 16  ;;  %v4834_v25 = vrot.slane %v6092_v61, 9  ;;  %v6094_v61 = vld [vmem:[%s6238_s24 + $0x7c] sm:$0xf]  ;;  %v6103_v55 = vld [vmem:[%s6238_s24 + $0x98] sm:$0x1] }
  0xd2   : > { %v3512_v15 = vor.u32 %v3511_v22, %v7176_v5  ;;  %v7231_v22 = vsel %vm6523_vm6, %v1232_v29, %v1233_v42  ;;  %v8233_v29 = vcombine.low %v7082_v21, %v7086_v6  ;;  %v8237_v21 = vcombine.low %v7116_v48, %v7120_v16  ;;  %v6099_v48 = vld [vmem:[%s6238_s24 + $0x84] sm:$0xf] }
  0xd3   : > { %v8238_v6 = vcombine.low %v7078_v7, %v7091_v26 }
  0xd4   : > { %5477 = vmatmul.mubr.msk.bf16.vlgmr.msra.gmra.mrb[0].mxu1 %vm649_vm3, %v8225_v58  ;;  %5637 = vmatmul.mubr.msk.bf16.gmra.mrb[16].mxu0 %vm649_vm3, %v8226_v30  ;;  %v7200_v58 = vsel %vm6523_vm6, %v1225_v40, %v1226_v62  ;;  %v3522_v30 = vrot.slane %v8228_v32, 4  ;;  %v1240_v62 = vrot.slane %v6091_v54, 5  ;;  %v3502_v40 = vor.u32 %v3501_v23, %v3498_v53 }
  0xd5   : > { %5509 = vmatpush3.bf16.msra.mxu1 %v6804_v3  ;;  %5480 = vmatprep.mubr.msk.bf16.mxu1 %vm649_vm3, %v4847_v33  ;;  %v6090_v3 = vld [vmem:[%s6238_s24 + $0x60] sm:$0xf]  ;;  %v7214_v32 = vsel %vm6523_vm6, %v4832_v59, %v1230_v17  ;;  %v8232_v23 = vshrl.u32 %v6872_v36, 16  ;;  %v1251_v53 = vrot.slane %v6094_v61, 5  ;;  %v7251_v42 = vrot.slane %v3512_v15, 4 }
  0xd6   : > { %5640 = vmatprep.mubr.msk.bf16.mxu0 %vm649_vm3, %v8230_v37  ;;  %v4833_v33 = vrot.slane %v6090_v3, 9  ;;  %5510 = vmatprep.subr.bf16.mxu1 %v6040_v50  ;;  %v1246_v37 = vrot.slane %v1244_v1, 4  ;;  %v7221_v3 = vld [vmem:[%s6238_s24 + $0x2c] sm:$0x1]  ;;  %v3526_v59 = vor.u32 %v3525_v4, %v3522_v30  ;;  %v7240_v43 = vsel %vm6523_vm6, %v1239_v10, %v1240_v62  ;;  %v6097_v61 = vld [vmem:[%s6238_s24 + $0x80] sm:$0x1] }
  0xd7   : > { %8231 = vst [vmem:[#allocation11_spill] sm:$0xff] %v7221_v3  ;;  %v3535_v54 = vrot.slane %v8232_v23, 4  ;;  %v7242_v36 = vrot.slane %v3502_v40, 4  ;;  %v3553_v23 = vshll.u32 %v6878_v47, 16  ;;  %v7257_v10 = vsel %vm6523_vm6, %v4834_v25, %v1244_v1  ;;  %v6100_v17 = vld [vmem:[%s6238_s24 + $0x94] sm:$0xf] }
  0xd8   : > { %v7236_v24 = vsel %vm6523_vm6, %v4833_v33, %v1237_v2  ;;  %v7253_v2 = vrot.slane %v3515_v9, 5  ;;  %v3539_v4 = vshll.u32 %v7221_v3, 16  ;;  %v8234_v30 = vcombine.low %v7050_v38, %v7055_v8  ;;  %v6096_v9 = vld [vmem:[%s6238_s24 + $0x78] sm:$0xf] }
  0xd9   : > { %5511 = vmatpush3.bf16.msra.mxu1 %v6040_v50  ;;  %v7248_v50 = vld [vmem:[%s8192_s1 + $0x40] sm:$0xff]   ;;  %v7270_v33 = vsel %vm6523_vm6, %v1246_v37, %v1247_v19  ;;  %v3536_v25 = vor.u32 %v3535_v54, %v7223_v28  ;;  %v8235_v1 = vshrl.u32 %v6875_v46, 16  ;;  %v8236_v40 = vshll.u32 %v6875_v46, 16 }
  0xda   : > { %5724 = vmatprep.subr.bf16.mxu1 %v7248_v50  ;;  %v3527_v19 = vrot.slane %v3526_v59, 4  ;;  %v4835_v37 = vrot.slane %v6096_v9, 9  ;;  %v1253_v54 = vrot.slane %v1251_v53, 4  ;;  %v7294_v16 = vrot.slane %v3553_v23, 5 }
  0xdb   : > { %v3546_v62 = vrot.slane %v8235_v1, 4  ;;  %v3549_v15 = vrot.slane %v8236_v40, 5  ;;  %v8240_v1 = vshrl.u32 %v6878_v47, 16  ;;  %v3508_v59 = vsel %vm6268_vm2, %v7242_v36, %v7176_v5 }
  0xdc   : > { %5481 = vmatmul.mubr.msk.bf16.gmra.mrb[4].mxu1 %vm649_vm3, %v8233_v29  ;;  %5641 = vmatmul.mubr.msk.bf16.gmra.mrb[20].mxu0 %vm649_vm3, %v8234_v30  ;;  %v1254_v29 = vrot.slane %v6097_v61, 5  ;;  %v7288_v30 = vld [vmem:[%s6238_s24 + $0x38] sm:$0x1]  ;;  %v3577_v23 = vshll.u32 %v6899_v60, 16  ;;  %v3537_v9 = vrot.slane %v3536_v25, 4  ;;  %v3541_v47 = vrot.slane %v3539_v4, 5 }
  0xdd   : > { %5484 = vmatprep.mubr.msk.bf16.mxu1 %vm649_vm3, %v8237_v21  ;;  %5644 = vmatprep.mubr.msk.bf16.mxu0 %vm649_vm3, %v8238_v6  ;;  %8239 = vst [vmem:[#allocation12_spill] sm:$0xff] %v7288_v30  ;;  %v3559_v40 = vrot.slane %v8240_v1, 4  ;;  %v3518_v21 = vsel %vm6268_vm2, %v7251_v42, %v7253_v2  ;;  %v3550_v61 = vor.u32 %v3549_v15, %v3546_v62  ;;  %v3563_v1 = vshll.u32 %v7288_v30, 16  ;;  %v6098_v25 = vld [vmem:[%s6238_s24 + $0x88] sm:$0xf] }
  0xde   : > { %v3532_v5 = vsel %vm6268_vm2, %v3527_v19, %v7223_v28  ;;  %v7315_v36 = vsel %vm6523_vm6, %v4835_v37, %v1251_v53  ;;  %v7319_v42 = vsel %vm6523_vm6, %v1253_v54, %v1254_v29  ;;  %v3601_v2 = vshll.u32 %v6906_v56, 16  ;;  %v7330_v37 = vld [vmem:[%s6238_s24 + $0x44] sm:$0x1]  ;;  %v6102_v30 = vld [vmem:[%s6238_s24 + $0x90] sm:$0xf] }
  0xdf   : > { %v3560_v4 = vor.u32 %v3559_v40, %v7294_v16  ;;  %v1258_v62 = vrot.slane %v6098_v25, 5  ;;  %v8241_v15 = vshrl.u32 %v6896_v27, 16  ;;  %v8242_v28 = vshll.u32 %v6896_v27, 16 }
  0xe0   : > { %v4836_v53 = vrot.slane %v6099_v48, 9  ;;  %v7332_v46 = vrot.slane %v3577_v23, 5  ;;  %v8243_v54 = vshrl.u32 %v6899_v60, 16  ;;  %v1265_v40 = vrot.slane %v6100_v17, 5 }
  0xe1   : > { %v3570_v6 = vrot.slane %v8241_v15, 4  ;;  %v3573_v19 = vrot.slane %v8242_v28, 5  ;;  %v8244_v25 = vcombine.low %v7144_v20, %v7148_v39  ;;  %v8245_v27 = vcombine.low %v7094_v34, %v7105_v12  ;;  %v6101_v15 = vld [vmem:[%s6238_s24 + $0x8c] sm:$0x1] }
  0xe2   : > { %v3583_v29 = vrot.slane %v8243_v54, 4  ;;  %v3542_v48 = vsel %vm6268_vm2, %v3537_v9, %v3541_v47  ;;  %v3551_v23 = vrot.slane %v3550_v61, 4  ;;  %v3565_v60 = vrot.slane %v3563_v1, 5 }
  0xe3   : > { %v1261_v28 = vrot.slane %v6101_v15, 5  ;;  %v8246_v17 = vcombine.low %v7174_v44, %v7200_v58  ;;  %v8247_v20 = vcombine.low %v7130_v49, %v7133_v41  ;;  %v8248_v39 = vshrl.u32 %v6903_v11, 16 }
  0xe4   : > { %5485 = vmatmul.mubr.msk.bf16.gmra.mrb[8].mxu1 %vm649_vm3, %v8244_v25  ;;  %5645 = vmatmul.mubr.msk.bf16.gmra.mrb[24].mxu0 %vm649_vm3, %v8245_v27  ;;  %v8249_v9 = vshll.u32 %v6903_v11, 16  ;;  %v7360_v61 = vrot.slane %v3601_v2, 5  ;;  %v8250_v1 = vshrl.u32 %v6906_v56, 16  ;;  %v3561_v44 = vrot.slane %v3560_v4, 4 }
  0xe5   : > { %5488 = vmatprep.mubr.msk.bf16.mxu1 %vm649_vm3, %v8246_v17  ;;  %5648 = vmatprep.mubr.msk.bf16.mxu0 %vm649_vm3, %v8247_v20  ;;  %v3594_v54 = vrot.slane %v8248_v39, 4  ;;  %v1260_v58 = vrot.slane %v1258_v62, 4  ;;  %v3574_v27 = vor.u32 %v3573_v19, %v3570_v6  ;;  %v3587_v15 = vshll.u32 %v7330_v37, 16  ;;  %v7366_v17 = vld [vmem:[%s6238_s24 + $0x50] sm:$0x1] }
  0xe6   : > { %v3597_v47 = vrot.slane %v8249_v9, 5  ;;  %v3607_v25 = vrot.slane %v8250_v1, 4  ;;  %v3584_v20 = vor.u32 %v3583_v29, %v7332_v46  ;;  %v4837_v3 = vrot.slane %v6102_v30, 9 }
  0xe7   : > { %v1267_v39 = vrot.slane %v1265_v40, 4  ;;  %v1268_v11 = vrot.slane %v6103_v55, 5  ;;  %v5147_v9 = vcombine.low %v3508_v59, %v3518_v21  ;;  %v5148_v2 = vcombine.low %v3532_v5, %v3542_v48 }
  0xe8   : > { %v4855_v56 = vcombine.low %v7315_v36, %v7319_v42  ;;  %v3625_v4 = vshll.u32 %v6939_v57, 16  ;;  %v7376_v6 = vsel %vm6523_vm6, %v4836_v53, %v1258_v62  ;;  %v3598_v19 = vor.u32 %v3597_v47, %v3594_v54 }
  0xe9   : > { %v3608_v29 = vor.u32 %v3607_v25, %v7360_v61  ;;  %v3611_v30 = vshll.u32 %v7366_v17, 16  ;;  %v3556_v55 = vsel %vm6268_vm2, %v3551_v23, %v7294_v16  ;;  %v3566_v59 = vsel %vm6268_vm2, %v3561_v44, %v3565_v60  ;;  %v7406_v60 = vld [vmem:[%s6238_s24 + $0x5c] sm:$0x1] }
  0xea   : > { %v7387_v21 = vsel %vm6523_vm6, %v1260_v58, %v1261_v28  ;;  %v3575_v5 = vrot.slane %v3574_v27, 4  ;;  %v3585_v48 = vrot.slane %v3584_v20, 4  ;;  %v3589_v62 = vrot.slane %v3587_v15, 5  ;;  %v6104_v15 = vld [vmem:[%s6238_s24 + $0xa0] sm:$0xf] }
  0xeb   : > { %v7391_v53 = vsel %vm6523_vm6, %v4837_v3, %v1265_v40  ;;  %v7395_v54 = vsel %vm6523_vm6, %v1267_v39, %v1268_v11  ;;  %v8251_v16 = vcombine.low %v7214_v32, %v7231_v22  ;;  %v8252_v23 = vcombine.low %v7152_v35, %v7159_v14 }
  0xec   : > { %v8253_v28 = vshrl.u32 %v6932_v13, 16  ;;  %v8254_v40 = vshll.u32 %v6932_v13, 16  ;;  %v7412_v1 = vrot.slane %v3625_v4, 5  ;;  %v8255_v32 = vshrl.u32 %v6939_v57, 16 }
  0xed   : > { %5489 = vmatmul.mubr.msk.bf16.gmra.mrb[12].mxu1 %vm649_vm3, %v8251_v16  ;;  %5649 = vmatmul.mubr.msk.bf16.gmra.mrb[28].mxu0 %vm649_vm3, %v8252_v23  ;;  %v8256_v25 = vcombine.low %v7236_v24, %v7240_v43  ;;  %v3599_v44 = vrot.slane %v3598_v19, 4  ;;  %v3609_v58 = vrot.slane %v3608_v29, 4  ;;  %v3613_v27 = vrot.slane %v3611_v30, 5  ;;  %v6106_v29 = vld [vmem:[%s6238_s24 + $0xa4] sm:$0x1] }
  0xee   : > { %v3618_v3 = vrot.slane %v8253_v28, 4  ;;  %v3621_v47 = vrot.slane %v8254_v40, 5  ;;  %v3631_v22 = vrot.slane %v8255_v32, 4  ;;  %5656 = vmatprep.mubr.msk.bf16.mxu0 %vm649_vm3, %v5147_v9  ;;  %v1272_v13 = vrot.slane %v6104_v15, 5  ;;  %v6105_v9 = vld [vmem:[%s6238_s24 + $0x9c] sm:$0xf] }
  0xef   : > { %5492 = vmatprep.mubr.msk.bf16.mxu1 %vm649_vm3, %v8256_v25  ;;  %v5149_v20 = vcombine.low %v3556_v55, %v3566_v59  ;;  %v4856_v39 = vcombine.low %v7376_v6, %v7387_v21  ;;  %v3580_v57 = vsel %vm6268_vm2, %v3575_v5, %v7332_v46  ;;  %v3649_v24 = vshll.u32 %v6955_v45, 16  ;;  %v6107_v16 = vld [vmem:[%s6238_s24 + $0xa8] sm:$0xf] }
  0xf0   : > { %v3590_v43 = vsel %vm6268_vm2, %v3585_v48, %v3589_v62  ;;  %v4857_v11 = vcombine.low %v7391_v53, %v7395_v54  ;;  %v4838_v4 = vrot.slane %v6105_v9, 9  ;;  %v3635_v19 = vshll.u32 %v7406_v60, 16  ;;  %v8272_v54 = vld [vmem:[#allocation9_spill] sm:$0xff] }
  0xf1   : > { %v1275_v30 = vrot.slane %v6106_v29, 5  ;;  %v3622_v55 = vor.u32 %v3621_v47, %v3618_v3  ;;  %v3632_v59 = vor.u32 %v3631_v22, %v7412_v1  ;;  %v1279_v46 = vrot.slane %v6667_v63, 5  ;;  %v8263_v29 = vld [vmem:[#allocation3_spill] sm:$0xff] }
  0xf2   : > { %v3604_v5 = vsel %vm6268_vm2, %v3599_v44, %v7360_v61  ;;  %v3614_v48 = vsel %vm6268_vm2, %v3609_v58, %v3613_v27  ;;  %v1274_v62 = vrot.slane %v1272_v13, 4  ;;  %v4839_v23 = vrot.slane %v6107_v16, 9  ;;  %v6043_v61 = vld [vmem:[%s8192_s1 + $0x88] sm:$0xff]  }
  0xf3   : > { %v8257_v28 = vshrl.u32 %v6947_v18, 16  ;;  %v8258_v3 = vshll.u32 %v6947_v18, 16  ;;  %v7447_v32 = vrot.slane %v3649_v24, 5  ;;  %v8259_v63 = vshrl.u32 %v6955_v45, 16  ;;  %v7459_v27 = vld [vmem:[%s6238_s24 + $0x68] sm:$0x1] }
  0xf4   : > { %v5150_v25 = vcombine.low %v3580_v57, %v3590_v43  ;;  %v7456_v44 = vsel %vm6523_vm6, %v4838_v4, %v1272_v13  ;;  %v3637_v58 = vrot.slane %v3635_v19, 5  ;;  %v3673_v18 = vshll.u32 %v6974_v0, 16  ;;  %v6108_v57 = vld [vmem:[%s6238_s24 + $0xb0] sm:$0x1] }
  0xf5   : > { %v3642_v40 = vrot.slane %v8257_v28, 4  ;;  %v3645_v47 = vrot.slane %v8258_v3, 5  ;;  %v3655_v22 = vrot.slane %v8259_v63, 4  ;;  %v8260_v15 = vcombine.low %v7257_v10, %v7270_v33  ;;  %5657 = vmatmul.mubr.msk.bf16.vlgmr.msra.gmra.mrb[0].mxu0 %vm649_vm3, %v5148_v2  ;;  %v8261_v2 = vld [vmem:[#allocation5_spill] sm:$0xff]  ;;  %v6109_v28 = vld [vmem:[%s6238_s24 + $0xb4] sm:$0xf] }
  0xf6   : > { %v3623_v45 = vrot.slane %v3622_v55, 4  ;;  %v3633_v24 = vrot.slane %v3632_v59, 4  ;;  %v1281_v9 = vrot.slane %v1279_v46, 4  ;;  %v1282_v43 = vrot.slane %v6108_v57, 5  ;;  %5689 = vmatpush3.bf16.msra.mxu0 %v6911_v52  ;;  %5660 = vmatprep.mubr.msk.bf16.mxu0 %vm649_vm3, %v5149_v20  ;;  %v7505_v3 = vld [vmem:[%s6238_s24 + $0x74] sm:$0x1] }
  0xf7   : > { %5493 = vmatmul.mubr.msk.bf16.gmra.mrb[16].mxu1 %vm649_vm3, %v8260_v15  ;;  %v5151_v13 = vcombine.low %v3604_v5, %v3614_v48  ;;  %v7475_v10 = vsel %vm6523_vm6, %v1274_v62, %v1275_v30  ;;  %v7479_v33 = vsel %vm6523_vm6, %v4839_v23, %v1279_v46  ;;  %v3697_v4 = vshll.u32 %v8261_v2, 16  ;;  %5690 = vmatprep.subr.bf16.mxu0 %v6043_v61  ;;  %v6110_v57 = vld [vmem:[%s6238_s24 + $0xbc] sm:$0x1] }
  0xf8   : > { %5496 = vmatprep.mubr.msk.bf16.mxu1 %vm649_vm3, %v4855_v56  ;;  %v3646_v52 = vor.u32 %v3645_v47, %v3642_v40  ;;  %v3656_v36 = vor.u32 %v3655_v22, %v7447_v32  ;;  %v3659_v42 = vshll.u32 %v7459_v27, 16  ;;  %v8262_v56 = vld [vmem:[#allocation2_spill] sm:$0xff]  ;;  %v8264_v30 = vshrl.u32 %v8263_v29, 16  ;;  %v8267_v47 = vld [vmem:[#allocation4_spill] sm:$0xff] }
  0xf9   : > { %v1286_v19 = vrot.slane %v8262_v56, 5  ;;  %v8265_v59 = vshll.u32 %v8263_v29, 16  ;;  %v7490_v5 = vrot.slane %v3673_v18, 5  ;;  %v8266_v48 = vshrl.u32 %v6974_v0, 16  ;;  %v7517_v56 = vld [vmem:[%s6238_s24 + $0x80] sm:$0x1] }
  0xfa   : > { %v3666_v55 = vrot.slane %v8264_v30, 4  ;;  %v3628_v62 = vsel %vm6268_vm2, %v3623_v45, %v7412_v1  ;;  %v3638_v16 = vsel %vm6268_vm2, %v3633_v24, %v3637_v58  ;;  %v7501_v23 = vsel %vm6523_vm6, %v1281_v9, %v1282_v43  ;;  %5691 = vmatpush3.bf16.msra.mxu0 %v6043_v61 }
  0xfb   : > { %v3669_v46 = vrot.slane %v8265_v59, 5  ;;  %v3679_v20 = vrot.slane %v8266_v48, 4  ;;  %v4840_v40 = vrot.slane %v6109_v28, 9  ;;  %v8268_v0 = vshrl.u32 %v8267_v47, 16 }
  0xfc   : > { %v8269_v22 = vshll.u32 %v8267_v47, 16  ;;  %v7511_v15 = vrot.slane %v3697_v4, 5  ;;  %v8270_v1 = vshrl.u32 %v8261_v2, 16  ;;  %v3647_v58 = vrot.slane %v3646_v52, 4  ;;  %v8271_v52 = vld [vmem:[#allocation7_spill] sm:$0xff] }
  0xfd   : > { %v3690_v63 = vrot.slane %v8268_v0, 4  ;;  %v3657_v24 = vrot.slane %v3656_v36, 4  ;;  %v3661_v9 = vrot.slane %v3659_v42, 5  ;;  %v1289_v43 = vrot.slane %v6110_v57, 5  ;;  %5661 = vmatmul.mubr.msk.bf16.gmra.mrb[4].mxu0 %vm649_vm3, %v5150_v25 }
  0xfe   : > { %v3693_v18 = vrot.slane %v8269_v22, 5  ;;  %v3703_v45 = vrot.slane %v8270_v1, 4  ;;  %v1288_v29 = vrot.slane %v1286_v19, 4  ;;  %v3670_v30 = vor.u32 %v3669_v46, %v3666_v55  ;;  %5664 = vmatprep.mubr.msk.bf16.mxu0 %vm649_vm3, %v5151_v13  ;;  %v8273_v46 = vld [vmem:[#allocation6_spill] sm:$0xff]  ;;  %v7562_v22 = vld [vmem:[%s6238_s24 + $0x8c] sm:$0x1] }
  0xff   : > { %v3680_v59 = vor.u32 %v3679_v20, %v7490_v5  ;;  %v3683_v48 = vshll.u32 %v7505_v3, 16  ;;  %v3811_v4 = vshll.u32 %v7094_v34, 16  ;;  %5497 = vmatmul.mubr.msk.bf16.gmra.mrb[20].mxu1 %vm649_vm3, %v4856_v39  ;;  %v4858_v61 = vcombine.low %v7456_v44, %v7475_v10 }
 0x100   : > { %v4859_v2 = vcombine.low %v7479_v33, %v7501_v23  ;;  %v3721_v36 = vshll.u32 %v8271_v52, 16  ;;  %5500 = vmatprep.mubr.msk.bf16.mxu1 %vm649_vm3, %v4857_v11  ;;  %v5152_v6 = vcombine.low %v3628_v62, %v3638_v16  ;;  %v3694_v21 = vor.u32 %v3693_v18, %v3690_v63  ;;  %v8277_v18 = vld [vmem:[#allocation8_spill] sm:$0xff] }
 0x101   : > { %v3704_v39 = vor.u32 %v3703_v45, %v7511_v15  ;;  %v3707_v25 = vshll.u32 %v7517_v56, 16  ;;  %v3652_v44 = vsel %vm6268_vm2, %v3647_v58, %v7447_v32  ;;  %v3662_v10 = vsel %vm6268_vm2, %v3657_v24, %v3661_v9 }
 0x102   : > { %v7546_v53 = vsel %vm6523_vm6, %v4840_v40, %v1286_v19  ;;  %v3745_v11 = vshll.u32 %v8272_v54, 16  ;;  %v7551_v13 = vsel %vm6523_vm6, %v1288_v29, %v1289_v43  ;;  %v3671_v33 = vrot.slane %v3670_v30, 4 }
 0x103   : > { %v3681_v42 = vrot.slane %v3680_v59, 4  ;;  %v3685_v55 = vrot.slane %v3683_v48, 5  ;;  %v8274_v20 = vshrl.u32 %v8273_v46, 16  ;;  %v8275_v62 = vshll.u32 %v8273_v46, 16  ;;  %v7579_v48 = vld [vmem:[%s6238_s24 + $0x98] sm:$0x1] }
 0x104   : > { %v7557_v23 = vrot.slane %v3721_v36, 5  ;;  %v8276_v19 = vshrl.u32 %v8271_v52, 16  ;;  %v5153_v40 = vcombine.low %v3652_v44, %v3662_v10  ;;  %v3695_v47 = vrot.slane %v3694_v21, 4  ;;  %v6111_v36 = vld [vmem:[%s6238_s24 + $0xc] sm:$0xf] }
 0x105   : > { %v3714_v32 = vrot.slane %v8274_v20, 4  ;;  %v3717_v16 = vrot.slane %v8275_v62, 5  ;;  %v3705_v0 = vrot.slane %v3704_v39, 4  ;;  %v3709_v63 = vrot.slane %v3707_v25, 5  ;;  %5665 = vmatmul.mubr.msk.bf16.gmra.mrb[8].mxu0 %vm649_vm3, %v5152_v6  ;;  %v6112_v21 = vld [vmem:[%s6238_s24 + $0x10] sm:$0xf] }
 0x106   : > { %v3727_v28 = vrot.slane %v8276_v19, 4  ;;  %v8278_v1 = vshrl.u32 %v8277_v18, 16  ;;  %v8279_v58 = vshll.u32 %v8277_v18, 16  ;;  %v7568_v9 = vrot.slane %v3745_v11, 5  ;;  %5668 = vmatprep.mubr.msk.bf16.mxu0 %vm649_vm3, %v5153_v40  ;;  %v7609_v40 = vld [vmem:[%s6238_s24 + $0xa4] sm:$0x1] }
 0x107   : > { %v8280_v57 = vshrl.u32 %v8272_v54, 16  ;;  %v3821_v29 = vshrl.u32 %v7105_v12, 16  ;;  %v3676_v30 = vsel %vm6268_vm2, %v3671_v33, %v7490_v5  ;;  %v3686_v59 = vsel %vm6268_vm2, %v3681_v42, %v3685_v55  ;;  %5501 = vmatmul.mubr.msk.bf16.gmra.mrb[24].mxu1 %vm649_vm3, %v4858_v61 }
 0x108   : > { %v3738_v45 = vrot.slane %v8278_v1, 4  ;;  %v3741_v24 = vrot.slane %v8279_v58, 5  ;;  %v3769_v52 = vshll.u32 %v7055_v8, 16  ;;  %v4931_v39 = vcombine.low %v6111_v36, %v6112_v21  ;;  %5504 = vmatprep.mubr.msk.bf16.mxu1 %vm649_vm3, %v4859_v2 }
 0x109   : > { %v3751_v43 = vrot.slane %v8280_v57, 4  ;;  %v3718_v25 = vor.u32 %v3717_v16, %v3714_v32  ;;  %v3728_v44 = vor.u32 %v3727_v28, %v7557_v23  ;;  %v3731_v10 = vshll.u32 %v7562_v22, 16 }
 0x10a   : > { %v4860_v5 = vcombine.low %v7546_v53, %v7551_v13  ;;  %v3700_v61 = vsel %vm6268_vm2, %v3695_v47, %v7511_v15  ;;  %v3710_v6 = vsel %vm6268_vm2, %v3705_v0, %v3709_v63  ;;  %v3793_v54 = vshll.u32 %v7091_v26, 16 }
 0x10b   : > { %v5154_v11 = vcombine.low %v3676_v30, %v3686_v59  ;;  %v3742_v33 = vor.u32 %v3741_v24, %v3738_v45  ;;  %v3752_v42 = vor.u32 %v3751_v43, %v7568_v9  ;;  %v3755_v2 = vshll.u32 %v7579_v48, 16  ;;  %v7621_v43 = vld [vmem:[%s6238_s24 + $0xb0] sm:$0x1] }
 0x10c   : > { %v8281_v55 = vshrl.u32 %v7050_v38, 16  ;;  %v8282_v53 = vshll.u32 %v7050_v38, 16  ;;  %v7604_v20 = vrot.slane %v3769_v52, 5  ;;  %v8283_v15 = vshrl.u32 %v7055_v8, 16 }
 0x10d   : > { %v5155_v62 = vcombine.low %v3700_v61, %v3710_v6  ;;  %v3719_v16 = vrot.slane %v3718_v25, 4  ;;  %v3729_v19 = vrot.slane %v3728_v44, 4  ;;  %v3733_v28 = vrot.slane %v3731_v10, 5  ;;  %5669 = vmatmul.mubr.msk.bf16.gmra.mrb[12].mxu0 %vm649_vm3, %v5154_v11  ;;  %v6113_v25 = vld [vmem:[%s6238_s24 + $0x18] sm:$0xf] }
 0x10e   : > { %v3762_v46 = vrot.slane %v8281_v55, 4  ;;  %v3765_v13 = vrot.slane %v8282_v53, 5  ;;  %v3775_v32 = vrot.slane %v8283_v15, 4  ;;  %v8284_v47 = vshrl.u32 %v7078_v7, 16  ;;  %v6114_v44 = vld [vmem:[%s6238_s24 + $0x1c] sm:$0xf] }
 0x10f   : > { %v8285_v63 = vshll.u32 %v7078_v7, 16  ;;  %v7615_v38 = vrot.slane %v3793_v54, 5  ;;  %v8286_v1 = vshrl.u32 %v7091_v26, 16  ;;  %v3832_v8 = vshrl.u32 %v7130_v49, 16  ;;  %5505 = vmatmul.mubr.msk.bf16.gmra.mrb[28].mxu1 %vm649_vm3, %v4860_v5  ;;  %5672 = vmatprep.mubr.msk.bf16.mxu0 %vm649_vm3, %v5155_v62  ;;  %v6115_v54 = vld [vmem:[%s6238_s24 + $0x24] sm:$0xf] }
 0x110   : > { %v3786_v0 = vrot.slane %v8284_v47, 4  ;;  %v3743_v58 = vrot.slane %v3742_v33, 4  ;;  %v3753_v24 = vrot.slane %v3752_v42, 4  ;;  %v3757_v57 = vrot.slane %v3755_v2, 5  ;;  %5512 = vmatprep.mubr.msk.bf16.mxu1 %vm649_vm3, %v4931_v39 }
 0x111   : > { %v3789_v18 = vrot.slane %v8285_v63, 5  ;;  %v3799_v45 = vrot.slane %v8286_v1, 4  ;;  %v3835_v30 = vshll.u32 %v7130_v49, 16  ;;  %v3766_v59 = vor.u32 %v3765_v13, %v3762_v46  ;;  %v7650_v13 = vld [vmem:[%s6238_s24 + $0xbc] sm:$0x1] }
 0x112   : > { %v3776_v7 = vor.u32 %v3775_v32, %v7604_v20  ;;  %v3779_v52 = vshll.u32 %v7609_v40, 16  ;;  %v3845_v26 = vshrl.u32 %v7133_v41, 16  ;;  %v3724_v36 = vsel %vm6268_vm2, %v3719_v16, %v7557_v23  ;;  %v6116_v23 = vld [vmem:[%s6238_s24 + $0x28] sm:$0xf] }
 0x113   : > { %v3734_v49 = vsel %vm6268_vm2, %v3729_v19, %v3733_v28  ;;  %v3817_v21 = vshll.u32 %v7105_v12, 16  ;;  %v4932_v10 = vcombine.low %v6113_v25, %v6114_v44  ;;  %v3790_v5 = vor.u32 %v3789_v18, %v3786_v0 }
 0x114   : > { %v3800_v61 = vor.u32 %v3799_v45, %v7615_v38  ;;  %v3803_v6 = vshll.u32 %v7621_v43, 16  ;;  %v4933_v11 = vcombine.low %v6115_v54, %v6116_v23  ;;  %v3748_v33 = vsel %vm6268_vm2, %v3743_v58, %v7568_v9  ;;  %v7668_v58 = vld [vmem:[%s6238_s24 + $0xc8] sm:$0x1] }
 0x115   : > { %v3758_v39 = vsel %vm6268_vm2, %v3753_v24, %v3757_v57  ;;  %v3841_v42 = vshll.u32 %v7133_v41, 16  ;;  %v5156_v2 = vcombine.low %v3724_v36, %v3734_v49  ;;  %v3767_v55 = vrot.slane %v3766_v59, 4 }
 0x116   : > { %v3777_v46 = vrot.slane %v3776_v7, 4  ;;  %v3781_v53 = vrot.slane %v3779_v52, 5  ;;  %v8287_v15 = vshrl.u32 %v7094_v34, 16  ;;  %v3813_v62 = vrot.slane %v3811_v4, 5  ;;  %v6117_v52 = vld [vmem:[%s8192_s1 + $0x48] sm:$0xff]  }
 0x117   : > { %v7656_v16 = vrot.slane %v3817_v21, 5  ;;  %v3823_v9 = vrot.slane %v3821_v29, 4  ;;  %v5157_v19 = vcombine.low %v3748_v33, %v3758_v39  ;;  %v3791_v41 = vrot.slane %v3790_v5, 4  ;;  %5513 = vmatmul.mubr.msk.bf16.vlgmr.msra.gmra.mrb[0].mxu1 %vm649_vm3, %v4932_v10  ;;  %5673 = vmatmul.mubr.msk.bf16.gmra.mrb[16].mxu0 %vm649_vm3, %v5156_v2  ;;  %v6120_v5 = vld [vmem:[%s6238_s24 + $0x3c] sm:$0xf] }
 0x118   : > { %v3810_v32 = vrot.slane %v8287_v15, 4  ;;  %v3801_v28 = vrot.slane %v3800_v61, 4  ;;  %v3805_v47 = vrot.slane %v3803_v6, 5  ;;  %v3834_v0 = vrot.slane %v3832_v8, 4  ;;  %5726 = vmatpush3.bf16.msra.mxu1 %v7248_v50  ;;  %5516 = vmatprep.mubr.msk.bf16.mxu1 %vm649_vm3, %v4933_v11  ;;  %v6121_v61 = vld [vmem:[%s6238_s24 + $0x40] sm:$0xf] }
 0x119   : > { %v3837_v63 = vrot.slane %v3835_v30, 5  ;;  %v7660_v18 = vrot.slane %v3841_v42, 5  ;;  %v3847_v1 = vrot.slane %v3845_v26, 4  ;;  %v3856_v45 = vshrl.u32 %v7152_v35, 16  ;;  %5676 = vmatprep.mubr.msk.bf16.mxu0 %vm649_vm3, %v5157_v19  ;;  %5725 = vmatprep.subr.bf16.mxu1 %v6117_v52  ;;  %v6119_v26 = vld [vmem:[%s6238_s24 + $0x34] sm:$0xf] }
 0x11a   : > { %v3772_v34 = vsel %vm6268_vm2, %v3767_v55, %v7604_v20  ;;  %v3827_v4 = vshll.u32 %v7650_v13, 16  ;;  %v3859_v12 = vshll.u32 %v7152_v35, 16  ;;  %v3782_v29 = vsel %vm6268_vm2, %v3777_v46, %v3781_v53  ;;  %v7698_v2 = vld [vmem:[%s6238_s24 + $0xd4] sm:$0x1]  ;;  %v6122_v15 = vld [vmem:[%s6238_s24 + $0x1c] sm:$0xf] }
 0x11b   : > { %v3814_v8 = vor.u32 %v3813_v62, %v3810_v32  ;;  %v3824_v24 = vor.u32 %v3823_v9, %v7656_v16  ;;  %v3869_v20 = vshrl.u32 %v7159_v14, 16  ;;  %v3796_v35 = vsel %vm6268_vm2, %v3791_v41, %v7615_v38  ;;  %v6118_v38 = vld [vmem:[%s6238_s24 + $0x30] sm:$0xf]  ;;  %v7709_v62 = vld [vmem:[%s6238_s24 + $0x78] sm:$0xf] }
 0x11c   : > { %v3865_v57 = vshll.u32 %v7159_v14, 16  ;;  %v3806_v30 = vsel %vm6268_vm2, %v3801_v28, %v3805_v47  ;;  %v3838_v59 = vor.u32 %v3837_v63, %v3834_v0  ;;  %v3848_v7 = vor.u32 %v3847_v1, %v7660_v18  ;;  %5727 = vmatpush3.bf16.msra.mxu1 %v6117_v52  ;;  %v7718_v28 = vld [vmem:[%s6238_s24 + $0x7c] sm:$0xf]  ;;  %v6125_v1 = vld [vmem:[%s6238_s24 + $0x48] sm:$0xf] }
 0x11d   : > { %v3851_v50 = vshll.u32 %v7668_v58, 16  ;;  %v4934_v14 = vcombine.low %v6118_v38, %v6119_v26  ;;  %v5158_v36 = vcombine.low %v3772_v34, %v3782_v29  ;;  %v3829_v49 = vrot.slane %v3827_v4, 5  ;;  %v6128_v29 = vld [vmem:[%s6238_s24 + $0x58] sm:$0xf]  ;;  %v6131_v26 = vld [vmem:[%s6238_s24 + $0x34] sm:$0xf] }
 0x11e   : > { %v3815_v21 = vrot.slane %v3814_v8, 4  ;;  %v3825_v25 = vrot.slane %v3824_v24, 4  ;;  %v3858_v44 = vrot.slane %v3856_v45, 4  ;;  %v3861_v10 = vrot.slane %v3859_v12, 5  ;;  %v6126_v45 = vld [vmem:[%s6238_s24 + $0x4c] sm:$0xf] }
 0x11f   : > { %v4935_v6 = vcombine.low %v6120_v5, %v6121_v61  ;;  %v5159_v54 = vcombine.low %v3796_v35, %v3806_v30  ;;  %v7695_v23 = vrot.slane %v3865_v57, 5  ;;  %v3871_v11 = vrot.slane %v3869_v20, 4  ;;  %5517 = vmatmul.mubr.msk.bf16.gmra.mrb[4].mxu1 %vm649_vm3, %v4934_v14  ;;  %5677 = vmatmul.mubr.msk.bf16.gmra.mrb[20].mxu0 %vm649_vm3, %v5158_v36  ;;  %v6127_v12 = vld [vmem:[%s6238_s24 + $0x54] sm:$0xf]  ;;  %v6129_v24 = vld [vmem:[%s6238_s24 + $0x28] sm:$0xf] }
 0x120   : > { %v3839_v33 = vrot.slane %v3838_v59, 4  ;;  %v3849_v39 = vrot.slane %v3848_v7, 4  ;;  %v3853_v42 = vrot.slane %v3851_v50, 5  ;;  %v3820_v55 = vsel %vm6268_vm2, %v3815_v21, %v7656_v16  ;;  %v6130_v57 = vld [vmem:[%s6238_s24 + $0x18] sm:$0xf]  ;;  %v8288_v7 = vld [vmem:[#allocation10_spill] sm:$0xff] }
 0x121   : > { %v3830_v46 = vsel %vm6268_vm2, %v3825_v25, %v3829_v49  ;;  %v3862_v53 = vor.u32 %v3861_v10, %v3858_v44  ;;  %v4203_v32 = vrot.slane %v6122_v15, 5  ;;  %v2201_v9 = vshrl.u32 %v7709_v62, 16  ;;  %5520 = vmatprep.mubr.msk.bf16.mxu1 %vm649_vm3, %v4935_v6  ;;  %5680 = vmatprep.mubr.msk.bf16.mxu0 %vm649_vm3, %v5159_v54  ;;  %v6132_v44 = vld [vmem:[%s6238_s24 + $0x24] sm:$0xf]  ;;  %v8289_v61 = vld [vmem:[#allocation11_spill] sm:$0xff] }
 0x122   : > { %v3872_v16 = vor.u32 %v3871_v11, %v7695_v23  ;;  %v3875_v19 = vshll.u32 %v7698_v2, 16  ;;  %v2204_v41 = vshll.u32 %v7709_v62, 16  ;;  %v2210_v47 = vshll.u32 %v7718_v28, 16  ;;  %v6134_v15 = vld [vmem:[%s6238_s24 + $0x40] sm:$0xf] }
 0x123   : > { %v3844_v0 = vsel %vm6268_vm2, %v3839_v33, %v7660_v18  ;;  %v3854_v63 = vsel %vm6268_vm2, %v3849_v39, %v3853_v42  ;;  %v4936_v34 = vcombine.low %v6125_v1, %v6126_v45  ;;  %v5160_v4 = vcombine.low %v3820_v55, %v3830_v46  ;;  %v6133_v39 = vld [vmem:[%s6238_s24 + $0x30] sm:$0xf] }
 0x124   : > { %v4937_v8 = vcombine.low %v6127_v12, %v6128_v29  ;;  %v4210_v20 = vrot.slane %v6129_v24, 5  ;;  %v3863_v35 = vrot.slane %v3862_v53, 4  ;;  %v5181_v30 = vrot.slane %v6130_v57, 9  ;;  %v7769_v1 = vld [vmem:[%s6238_s24 + $0x70] sm:$0xf] }
 0x125   : > { %v4205_v59 = vrot.slane %v4203_v32, 4  ;;  %v4206_v18 = vrot.slane %v8288_v7, 5  ;;  %v5161_v50 = vcombine.low %v3844_v0, %v3854_v63  ;;  %v3873_v52 = vrot.slane %v3872_v16, 4  ;;  %v7762_v16 = vld [vmem:[%s6238_s24 + $0x80] sm:$0x1] }
 0x126   : > { %v3877_v38 = vrot.slane %v3875_v19, 5  ;;  %v4217_v14 = vrot.slane %v6131_v26, 5  ;;  %v7734_v36 = vrot.slane %v2201_v9, 4  ;;  %v7736_v49 = vrot.slane %v2204_v41, 5  ;;  %v6136_v41 = vld [vmem:[%s6238_s24 + $0x60] sm:$0xf] }
 0x127   : > { %v2214_v21 = vshrl.u32 %v7718_v28, 16  ;;  %v7739_v25 = vrot.slane %v2210_v47, 5  ;;  %v5182_v10 = vrot.slane %v6132_v44, 9  ;;  %v4212_v5 = vrot.slane %v4210_v20, 4  ;;  %5521 = vmatmul.mubr.msk.bf16.gmra.mrb[8].mxu1 %vm649_vm3, %v4936_v34  ;;  %5681 = vmatmul.mubr.msk.bf16.gmra.mrb[24].mxu0 %vm649_vm3, %v5160_v4  ;;  %v6137_v47 = vld [vmem:[%s6238_s24 + $0x64] sm:$0xf] }
 0x128   : > { %v4213_v6 = vrot.slane %v8289_v61, 5  ;;  %v3868_v54 = vsel %vm6268_vm2, %v3863_v35, %v7695_v23  ;;  %v4204_v11 = vsel %vm6523_vm6, %v5181_v30, %v4203_v32  ;;  %v4207_v33 = vsel %vm6523_vm6, %v4205_v59, %v4206_v18  ;;  %5524 = vmatprep.mubr.msk.bf16.mxu1 %vm649_vm3, %v4937_v8  ;;  %5684 = vmatprep.mubr.msk.bf16.mxu0 %vm649_vm3, %v5161_v50  ;;  %v8290_v23 = vld [vmem:[#allocation12_spill] sm:$0xff]  ;;  %v6138_v63 = vld [vmem:[%s6238_s24 + $0x6c] sm:$0xf]  ;;  %v7783_v29 = vld [vmem:[%s6238_s24 + $0x84] sm:$0xf] }
 0x129   : > { %v5183_v42 = vrot.slane %v6133_v39, 9  ;;  %v3878_v55 = vsel %vm6268_vm2, %v3873_v52, %v3877_v38  ;;  %v4219_v46 = vrot.slane %v4217_v14, 4  ;;  %v4220_v53 = vrot.slane %v8290_v23, 5  ;;  %v7786_v8 = vld [vmem:[%s6238_s24 + $0x88] sm:$0xf] }
 0x12a   : > { %v4224_v32 = vrot.slane %v6134_v15, 5  ;;  %v7759_v9 = vrot.slane %v2214_v21, 4  ;;  %v2220_v19 = vshll.u32 %v7762_v16, 16  ;;  %v4938_v0 = vcombine.low %v6136_v41, %v6137_v47  ;;  %v6142_v30 = vld [vmem:[%s6238_s24 + $0x3c] sm:$0xf] }
 0x12b   : > { %v4939_v45 = vcombine.low %v6138_v63, %v7769_v1  ;;  %v4940_v34 = vcombine.low %v7709_v62, %v7718_v28  ;;  %v7776_v4 = vsel %vm6523_vm6, %v5182_v10, %v4210_v20  ;;  %v7780_v12 = vsel %vm6523_vm6, %v4212_v5, %v4213_v6  ;;  %v7800_v18 = vld [vmem:[%s6238_s24 + $0x90] sm:$0xf]  ;;  %v7803_v50 = vld [vmem:[%s6238_s24 + $0x94] sm:$0xf]  ;;  %v6145_v21 = vld [vmem:[%s6238_s24 + $0x4c] sm:$0xf] }
 0x12c   : > { %v4941_v24 = vcombine.low %v7783_v29, %v7786_v8  ;;  %v5162_v35 = vcombine.low %v3868_v54, %v3878_v55  ;;  %v5201_v57 = vcombine.low %v4204_v11, %v4207_v33  ;;  %v7792_v20 = vsel %vm6523_vm6, %v5183_v42, %v4217_v14  ;;  %v7812_v61 = vld [vmem:[%s6238_s24 + $0xa0] sm:$0xf]  ;;  %v7815_v6 = vld [vmem:[%s6238_s24 + $0x9c] sm:$0xf]  ;;  %v6148_v11 = vld [vmem:[%s6238_s24 + $0x48] sm:$0xf] }
 0x12d   : > { %v5184_v59 = vrot.slane %v6142_v30, 9  ;;  %v7797_v7 = vsel %vm6523_vm6, %v4219_v46, %v4220_v53  ;;  %v4942_v52 = vcombine.low %v7800_v18, %v7803_v50  ;;  %v4226_v38 = vrot.slane %v4224_v32, 4  ;;  %v6149_v39 = vld [vmem:[%s6238_s24 + $0x58] sm:$0xf]  ;;  %v6150_v42 = vld [vmem:[%s6238_s24 + $0x64] sm:$0xf] }
 0x12e   : > { %v4227_v26 = vrot.slane %v7330_v37, 5  ;;  %v5202_v14 = vcombine.low %v7776_v4, %v7780_v12  ;;  %v4231_v44 = vrot.slane %v6145_v21, 5  ;;  %v2177_v10 = vshrl.u32 %v6138_v63, 16  ;;  %v6151_v15 = vld [vmem:[%s6238_s24 + $0x70] sm:$0xf] }
 0x12f   : > { %v2180_v5 = vshll.u32 %v6138_v63, 16  ;;  %v4943_v54 = vcombine.low %v7815_v6, %v7812_v61  ;;  %v5185_v33 = vrot.slane %v6148_v11, 9  ;;  %v4238_v37 = vrot.slane %v6149_v39, 5  ;;  %5525 = vmatmul.mubr.msk.bf16.gmra.mrb[12].mxu1 %vm649_vm3, %v4938_v0  ;;  %5685 = vmatmul.mubr.msk.bf16.gmra.mrb[28].mxu0 %vm649_vm3, %v5162_v35  ;;  %v6152_v0 = vld [vmem:[%s6238_s24 + $0x54] sm:$0xf] }
 0x130   : > { %v4245_v55 = vrot.slane %v6150_v42, 5  ;;  %v5203_v46 = vcombine.low %v7792_v20, %v7797_v7  ;;  %v7828_v23 = vsel %vm6523_vm6, %v5184_v59, %v4224_v32  ;;  %v4234_v53 = vrot.slane %v7366_v17, 5  ;;  %5528 = vmatprep.mubr.msk.bf16.mxu1 %vm649_vm3, %v4939_v45  ;;  %5692 = vmatprep.mubr.msk.bf16.mxu0 %vm649_vm3, %v5201_v57  ;;  %v6153_v30 = vld [vmem:[%s6238_s24 + $0x60] sm:$0xf]  ;;  %v6156_v21 = vld [vmem:[%s6238_s24 + $0x6c] sm:$0xf] }
 0x131   : > { %v4252_v41 = vrot.slane %v6151_v15, 5  ;;  %v7836_v47 = vsel %vm6523_vm6, %v4226_v38, %v4227_v26  ;;  %v5186_v63 = vrot.slane %v6152_v0, 9  ;;  %v2186_v32 = vshll.u32 %v7769_v1, 16  ;;  %v7845_v38 = vld [vmem:[%s6238_s24 + $0xac] sm:$0xf] }
 0x132   : > { %v2190_v4 = vshrl.u32 %v7769_v1, 16  ;;  %v4233_v17 = vrot.slane %v4231_v44, 4  ;;  %v4241_v12 = vrot.slane %v7406_v60, 5  ;;  %v2179_v35 = vrot.slane %v2177_v10, 4  ;;  %v7848_v26 = vld [vmem:[%s6238_s24 + $0xa8] sm:$0xf] }
 0x133   : > { %v2182_v45 = vrot.slane %v2180_v5, 5  ;;  %v4240_v20 = vrot.slane %v4238_v37, 4  ;;  %v5187_v57 = vrot.slane %v6153_v30, 9  ;;  %v4247_v59 = vrot.slane %v4245_v55, 4  ;;  %v7872_v30 = vld [vmem:[%s6238_s24 + $0xb4] sm:$0xf] }
 0x134   : > { %v4248_v7 = vrot.slane %v7459_v27, 5  ;;  %v4944_v1 = vcombine.low %v7848_v26, %v7845_v38  ;;  %v5188_v11 = vrot.slane %v6156_v21, 9  ;;  %v4254_v60 = vrot.slane %v4252_v41, 4  ;;  %v7915_v28 = vld [vmem:[%s6238_s24 + $0xc4] sm:$0xf] }
 0x135   : > { %v4255_v10 = vrot.slane %v7505_v3, 5  ;;  %v5204_v5 = vcombine.low %v7828_v23, %v7836_v47  ;;  %v7858_v39 = vsel %vm6523_vm6, %v5185_v33, %v4231_v44  ;;  %v7860_v27 = vrot.slane %v2186_v32, 5  ;;  %v7869_v3 = vld [vmem:[%s6238_s24 + $0xb8] sm:$0xf]  ;;  %v6159_v47 = vld [vmem:[%s6238_s24 + $0x7c] sm:$0xf] }
 0x136   : > { %v2192_v42 = vrot.slane %v2190_v4, 4  ;;  %v4235_v15 = vsel %vm6523_vm6, %v4233_v17, %v4234_v53  ;;  %v7866_v0 = vsel %vm6523_vm6, %v5186_v63, %v4238_v37  ;;  %v4945_v44 = vcombine.low %v7872_v30, %v7869_v3  ;;  %v6160_v4 = vld [vmem:[%s6238_s24 + $0x74] sm:$0x1] }
 0x137   : > { %v2183_v33 = vor.u32 %v2182_v45, %v2179_v35  ;;  %v7878_v23 = vsel %vm6523_vm6, %v4240_v20, %v4241_v12  ;;  %v7882_v53 = vsel %vm6523_vm6, %v5187_v57, %v4245_v55  ;;  %v7886_v37 = vsel %vm6523_vm6, %v4247_v59, %v4248_v7  ;;  %5529 = vmatmul.mubr.msk.bf16.gmra.mrb[16].mxu1 %vm649_vm3, %v4940_v34  ;;  %v6161_v12 = vld [vmem:[%s6238_s24 + $0x78] sm:$0xf]  ;;  %v7918_v34 = vld [vmem:[%s6238_s24 + $0xc0] sm:$0xf] }
 0x138   : > { %v4259_v63 = vrot.slane %v6159_v47, 5  ;;  %5693 = vmatmul.mubr.msk.bf16.vlgmr.msra.gmra.mrb[0].mxu0 %vm649_vm3, %v5202_v14  ;;  %v7896_v32 = vsel %vm6523_vm6, %v5188_v11, %v4252_v41  ;;  %v7900_v55 = vsel %vm6523_vm6, %v4254_v60, %v4255_v10  ;;  %v2196_v17 = vshll.u32 %v6160_v4, 16  ;;  %5532 = vmatprep.mubr.msk.bf16.mxu1 %vm649_vm3, %v4941_v24  ;;  %v6164_v60 = vld [vmem:[%s6238_s24 + $0x84] sm:$0xf]  ;;  %v6165_v47 = vld [vmem:[%s6238_s24 + $0x88] sm:$0xf] }
 0x139   : > { %v5189_v35 = vrot.slane %v6161_v12, 9  ;;  %v7906_v45 = vrot.slane %v2220_v19, 5  ;;  %5696 = vmatprep.mubr.msk.bf16.mxu0 %vm649_vm3, %v5203_v46  ;;  %v5205_v62 = vcombine.low %v7858_v39, %v4235_v15  ;;  %v4946_v14 = vcombine.low %v7918_v34, %v7915_v28  ;;  %v6166_v4 = vld [vmem:[%s6238_s24 + $0x94] sm:$0xf] }
 0x13a   : > { %v2193_v16 = vor.u32 %v2192_v42, %v7860_v27  ;;  %v5206_v19 = vcombine.low %v7866_v0, %v7878_v23  ;;  %v7925_v41 = vrot.slane %v2183_v33, 4  ;;  %v2207_v24 = vor.u32 %v7736_v49, %v7734_v36 }
 0x13b   : > { %v2217_v46 = vor.u32 %v7759_v9, %v7739_v25  ;;  %v5207_v20 = vcombine.low %v7882_v53, %v7886_v37  ;;  %v5208_v57 = vcombine.low %v7896_v32, %v7900_v55  ;;  %v4261_v59 = vrot.slane %v4259_v63, 4 }
 0x13c   : > { %v4262_v7 = vrot.slane %v7517_v56, 5  ;;  %v7936_v21 = vrot.slane %v2196_v17, 5  ;;  %v7940_v11 = vsel %vm6523_vm6, %v5189_v35, %v4259_v63  ;;  %v2225_v36 = vshrl.u32 %v7783_v29, 16 }
 0x13d   : > { %v2228_v49 = vshll.u32 %v7783_v29, 16  ;;  %v7944_v9 = vrot.slane %v2193_v16, 4  ;;  %v5190_v10 = vrot.slane %v6164_v60, 9  ;;  %v2234_v39 = vshll.u32 %v7786_v8, 16 }
 0x13e   : > { %v2238_v42 = vshrl.u32 %v7786_v8, 16  ;;  %v2189_v56 = vsel %vm6268_vm2, %v7925_v41, %v7860_v27  ;;  %v7953_v15 = vrot.slane %v2207_v24, 4  ;;  %v7955_v33 = vrot.slane %v2217_v46, 4 }
 0x13f   : > { %v4266_v63 = vrot.slane %v6165_v47, 5  ;;  %v7960_v29 = vsel %vm6523_vm6, %v4261_v59, %v4262_v7  ;;  %v4273_v17 = vrot.slane %v6166_v4, 5  ;;  %v2249_v12 = vshrl.u32 %v7800_v18, 16  ;;  %5533 = vmatmul.mubr.msk.bf16.gmra.mrb[20].mxu1 %vm649_vm3, %v4942_v52  ;;  %v6167_v7 = vld [vmem:[%s6238_s24 + $0x8c] sm:$0x1] }
 0x140   : > { %v2252_v8 = vshll.u32 %v7800_v18, 16  ;;  %5697 = vmatmul.mubr.msk.bf16.gmra.mrb[4].mxu0 %vm649_vm3, %v5204_v5  ;;  %v2227_v35 = vrot.slane %v2225_v36, 4  ;;  %v2230_v16 = vrot.slane %v2228_v49, 5  ;;  %v2258_v24 = vshll.u32 %v7803_v50, 16  ;;  %5536 = vmatprep.mubr.msk.bf16.mxu1 %vm649_vm3, %v4943_v54  ;;  %v6168_v49 = vld [vmem:[%s6238_s24 + $0x90] sm:$0xf] }
 0x141   : > { %v2262_v46 = vshrl.u32 %v7803_v50, 16  ;;  %5700 = vmatprep.mubr.msk.bf16.mxu0 %vm649_vm3, %v5205_v62  ;;  %v2199_v18 = vsel %vm6268_vm2, %v7944_v9, %v7936_v21  ;;  %v4269_v52 = vrot.slane %v7562_v22, 5  ;;  %v7982_v5 = vrot.slane %v2234_v39, 5 }
 0x142   : > { %v2240_v59 = vrot.slane %v2238_v42, 4  ;;  %v5209_v50 = vcombine.low %v7940_v11, %v7960_v29  ;;  %v2213_v54 = vsel %vm6268_vm2, %v7953_v15, %v7739_v25  ;;  %v4268_v62 = vrot.slane %v4266_v63, 4 }
 0x143   : > { %v2244_v36 = vshll.u32 %v6167_v7, 16  ;;  %v5191_v60 = vrot.slane %v6168_v49, 9  ;;  %v4275_v21 = vrot.slane %v4273_v17, 4  ;;  %v2251_v9 = vrot.slane %v2249_v12, 4  ;;  %v6169_v12 = vld [vmem:[%s6238_s24 + $0xa0] sm:$0xf] }
 0x144   : > { %v2254_v22 = vrot.slane %v2252_v8, 5  ;;  %v2231_v39 = vor.u32 %v2230_v16, %v2227_v35  ;;  %v4276_v42 = vrot.slane %v7579_v48, 5  ;;  %v7993_v47 = vrot.slane %v2258_v24, 5 }
 0x145   : > { %v2264_v4 = vrot.slane %v2262_v46, 4  ;;  %v2223_v25 = vsel %vm6268_vm2, %v7955_v33, %v7906_v45  ;;  %v8001_v15 = vsel %vm6523_vm6, %v5190_v10, %v4266_v63  ;;  %v2241_v7 = vor.u32 %v2240_v59, %v7982_v5 }
 0x146   : > { %v4280_v8 = vrot.slane %v6169_v12, 5  ;;  %v8007_v48 = vsel %vm6523_vm6, %v4268_v62, %v4269_v52  ;;  %v2246_v35 = vrot.slane %v2244_v36, 5  ;;  %v2273_v16 = vshrl.u32 %v7815_v6, 16  ;;  %v6170_v52 = vld [vmem:[%s6238_s24 + $0x98] sm:$0x1] }
 0x147   : > { %v2276_v24 = vshll.u32 %v7815_v6, 16  ;;  %v8013_v45 = vsel %vm6523_vm6, %v5191_v60, %v4273_v17  ;;  %v2255_v10 = vor.u32 %v2254_v22, %v2251_v9  ;;  %v2282_v33 = vshll.u32 %v7812_v61, 16  ;;  %5537 = vmatmul.mubr.msk.bf16.gmra.mrb[24].mxu1 %vm649_vm3, %v4944_v1  ;;  %v6171_v1 = vld [vmem:[%s6238_s24 + $0x9c] sm:$0xf]  ;;  %v6172_v9 = vld [vmem:[%s6238_s24 + $0xac] sm:$0xf] }
 0x148   : > { %v2286_v63 = vshrl.u32 %v7812_v61, 16  ;;  %5701 = vmatmul.mubr.msk.bf16.gmra.mrb[8].mxu0 %vm649_vm3, %v5206_v19  ;;  %v2232_v6 = vrot.slane %v2231_v39, 4  ;;  %v8027_v17 = vsel %vm6523_vm6, %v4275_v21, %v4276_v42  ;;  %v2265_v46 = vor.u32 %v2264_v4, %v7993_v47  ;;  %5540 = vmatprep.mubr.msk.bf16.mxu1 %vm649_vm3, %v4945_v44  ;;  %v6173_v39 = vld [vmem:[%s6238_s24 + $0xa4] sm:$0x1] }
 0x149   : > { %v2268_v59 = vshll.u32 %v6170_v52, 16  ;;  %5704 = vmatprep.mubr.msk.bf16.mxu0 %vm649_vm3, %v5207_v20  ;;  %v2242_v61 = vrot.slane %v2241_v7, 4  ;;  %v5192_v0 = vrot.slane %v6171_v1, 9  ;;  %v4282_v23 = vrot.slane %v4280_v8, 4 }
 0x14a   : > { %v4283_v19 = vrot.slane %v7609_v40, 5  ;;  %v4977_v62 = vcombine.low %v2189_v56, %v2199_v18  ;;  %v8046_v36 = vcombine.low %v2213_v54, %v2223_v25  ;;  %v2275_v44 = vrot.slane %v2273_v16, 4 }
 0x14b   : > { %v2278_v53 = vrot.slane %v2276_v24, 5  ;;  %v5210_v37 = vcombine.low %v8001_v15, %v8007_v48  ;;  %v2256_v20 = vrot.slane %v2255_v10, 4  ;;  %v8050_v49 = vrot.slane %v2282_v33, 5 }
 0x14c   : > { %v2288_v60 = vrot.slane %v2286_v63, 4  ;;  %v2237_v40 = vsel %vm6268_vm2, %v2232_v6, %v7982_v5  ;;  %v5211_v27 = vcombine.low %v8013_v45, %v8027_v17  ;;  %v2266_v41 = vrot.slane %v2265_v46, 4 }
 0x14d   : > { %v2270_v56 = vrot.slane %v2268_v59, 5  ;;  %v2247_v18 = vsel %vm6268_vm2, %v2242_v61, %v2246_v35  ;;  %v8061_v54 = vsel %vm6523_vm6, %v5192_v0, %v4280_v8  ;;  %v8065_v21 = vsel %vm6523_vm6, %v4282_v23, %v4283_v19 }
 0x14e   : > { %v4287_v22 = vrot.slane %v6172_v9, 5  ;;  %v2279_v5 = vor.u32 %v2278_v53, %v2275_v44  ;;  %v2292_v42 = vshll.u32 %v6173_v39, 16  ;;  %v2297_v4 = vshrl.u32 %v7848_v26, 16  ;;  %v6176_v53 = vld [vmem:[%s6238_s24 + $0xb4] sm:$0xf] }
 0x14f   : > { %v2300_v25 = vshll.u32 %v7848_v26, 16  ;;  %v2261_v7 = vsel %vm6268_vm2, %v2256_v20, %v7993_v47  ;;  %v2289_v12 = vor.u32 %v2288_v60, %v8050_v49  ;;  %v2306_v8 = vshll.u32 %v7845_v38, 16  ;;  %5541 = vmatmul.mubr.msk.bf16.gmra.mrb[28].mxu1 %vm649_vm3, %v4946_v14  ;;  %v6174_v47 = vld [vmem:[%s6238_s24 + $0xa8] sm:$0xf]  ;;  %v6179_v9 = vld [vmem:[%s6238_s24 + $0xc4] sm:$0xf] }
 0x150   : > { %v2310_v35 = vshrl.u32 %v7845_v38, 16  ;;  %5705 = vmatmul.mubr.msk.bf16.gmra.mrb[12].mxu0 %vm649_vm3, %v5208_v57  ;;  %v2271_v26 = vsel %vm6268_vm2, %v2266_v41, %v2270_v56  ;;  %v5193_v16 = vrot.slane %v6174_v47, 9  ;;  %v2321_v24 = vshrl.u32 %v7872_v30, 16  ;;  %5564 = vmatprep.mubr.msk.bf16.mxu1 %vm649_vm3, %v4977_v62  ;;  %v6175_v62 = vld [vmem:[%s6238_s24 + $0xb0] sm:$0x1] }
 0x151   : > { %v2324_v10 = vshll.u32 %v7872_v30, 16  ;;  %5708 = vmatprep.mubr.msk.bf16.mxu0 %vm649_vm3, %v5209_v50  ;;  %v4289_v38 = vrot.slane %v4287_v22, 4  ;;  %v4290_v32 = vrot.slane %v7621_v43, 5  ;;  %v2330_v55 = vshll.u32 %v7869_v3, 16  ;;  %v6177_v41 = vld [vmem:[%s6238_s24 + $0xb8] sm:$0xf] }
 0x152   : > { %v2334_v14 = vshrl.u32 %v7869_v3, 16  ;;  %v4979_v57 = vcombine.low %v2237_v40, %v2247_v18  ;;  %v2280_v33 = vrot.slane %v2279_v5, 4  ;;  %v2299_v63 = vrot.slane %v2297_v4, 4  ;;  %v6178_v18 = vld [vmem:[%s6238_s24 + $0xbc] sm:$0x1] }
 0x153   : > { %v2302_v6 = vrot.slane %v2300_v25, 5  ;;  %v2290_v30 = vrot.slane %v2289_v12, 4  ;;  %v2294_v46 = vrot.slane %v2292_v42, 5  ;;  %v8098_v52 = vrot.slane %v2306_v8, 5 }
 0x154   : > { %v2312_v11 = vrot.slane %v2310_v35, 4  ;;  %v4980_v29 = vcombine.low %v2261_v7, %v2271_v26  ;;  %v5212_v43 = vcombine.low %v8061_v54, %v8065_v21  ;;  %v2323_v50 = vrot.slane %v2321_v24, 4  ;;  %v6180_v35 = vld [vmem:[%s6238_s24 + $0xc0] sm:$0xf] }
 0x155   : > { %v2326_v59 = vrot.slane %v2324_v10, 5  ;;  %v4288_v3 = vsel %vm6523_vm6, %v5193_v16, %v4287_v22  ;;  %v4291_v61 = vsel %vm6523_vm6, %v4289_v38, %v4290_v32  ;;  %v8106_v1 = vrot.slane %v2330_v55, 5 }
 0x156   : > { %v2336_v0 = vrot.slane %v2334_v14, 4  ;;  %v2285_v23 = vsel %vm6268_vm2, %v2280_v33, %v8050_v49  ;;  %v2303_v19 = vor.u32 %v2302_v6, %v2299_v63  ;;  %v2316_v44 = vshll.u32 %v6175_v62, 16 }
 0x157   : > { %v5194_v20 = vrot.slane %v6176_v53, 9  ;;  %v2295_v60 = vsel %vm6268_vm2, %v2290_v30, %v2294_v46  ;;  %v2313_v40 = vor.u32 %v2312_v11, %v8098_v52  ;;  %v4294_v56 = vrot.slane %v6177_v41, 5  ;;  %5565 = vmatmul.mubr.msk.bf16.vlgmr.msra.gmra.mrb[16].mxu1 %vm649_vm3, %v8046_v36  ;;  %v6182_v46 = vld [vmem:[%s6238_s24 + $0xd0] sm:$0xf] }
 0x158   : > { %v2340_v54 = vshll.u32 %v6178_v18, 16  ;;  %5709 = vmatmul.mubr.msk.bf16.gmra.mrb[16].mxu0 %vm649_vm3, %v5210_v37  ;;  %v5213_v49 = vcombine.low %v4288_v3, %v4291_v61  ;;  %v2327_v21 = vor.u32 %v2326_v59, %v2323_v50  ;;  %v4301_v22 = vrot.slane %v6179_v9, 5  ;;  %5568 = vmatprep.mubr.msk.bf16.mxu1 %vm649_vm3, %v4979_v57  ;;  %v6181_v57 = vld [vmem:[%s6238_s24 + $0xc8] sm:$0x1]  ;;  %v6183_v3 = vld [vmem:[%s6238_s24 + $0xcc] sm:$0xf] }
 0x159   : > { %v2345_v5 = vshrl.u32 %v7918_v34, 16  ;;  %5712 = vmatprep.mubr.msk.bf16.mxu0 %vm649_vm3, %v5211_v27  ;;  %v2337_v36 = vor.u32 %v2336_v0, %v8106_v1  ;;  %v2348_v15 = vshll.u32 %v7918_v34, 16  ;;  %v2354_v48 = vshll.u32 %v7915_v28, 16  ;;  %s5237_s24 = sshll.u32 %s8292_s10, 3 }
 0x15a   : > { %v2358_v37 = vshrl.u32 %v7915_v28, 16  ;;  %v4981_v39 = vcombine.low %v2285_v23, %v2295_v60  ;;  %v2304_v42 = vrot.slane %v2303_v19, 4  ;;  %v2318_v4 = vrot.slane %v2316_v44, 5  ;;  %s143_s6 = scalar_lea.vmem %s8193_s2, %s5237_s24 }
 0x15b   : > { %v4297_v25 = vrot.slane %v7650_v13, 5  ;;  %v2314_v7 = vrot.slane %v2313_v40, 4  ;;  %v4296_v12 = vrot.slane %v4294_v56, 4  ;;  %v2342_v8 = vrot.slane %v2340_v54, 5 }
 0x15c   : > { %v5195_v45 = vrot.slane %v6180_v35, 9  ;;  %v2328_v17 = vrot.slane %v2327_v21, 4  ;;  %v4303_v27 = vrot.slane %v4301_v22, 4  ;;  %v4304_v26 = vrot.slane %v7668_v58, 5 }
 0x15d   : > { %v2347_v34 = vrot.slane %v2345_v5, 4  ;;  %v2338_v47 = vrot.slane %v2337_v36, 4  ;;  %v2350_v16 = vrot.slane %v2348_v15, 5  ;;  %v2356_v24 = vrot.slane %v2354_v48, 5 }
 0x15e   : > { %v2360_v28 = vrot.slane %v2358_v37, 4  ;;  %v2309_v10 = vsel %vm6268_vm2, %v2304_v42, %v8098_v52  ;;  %v2319_v13 = vsel %vm6268_vm2, %v2314_v7, %v2318_v4  ;;  %v4295_v38 = vsel %vm6523_vm6, %v5194_v20, %v4294_v56 }
 0x15f   : > { %v4298_v32 = vsel %vm6523_vm6, %v4296_v12, %v4297_v25  ;;  %5569 = vmatmul.mubr.msk.bf16.gmra.mrb[20].mxu1 %vm649_vm3, %v4980_v29  ;;  %v2333_v58 = vsel %vm6268_vm2, %v2328_v17, %v8106_v1  ;;  %v4302_v55 = vsel %vm6523_vm6, %v5195_v45, %v4301_v22  ;;  %v4305_v14 = vsel %vm6523_vm6, %v4303_v27, %v4304_v26 }
 0x160   : > { %5713 = vmatmul.mubr.msk.bf16.gmra.mrb[20].mxu0 %vm649_vm3, %v5212_v43  ;;  %v2364_v33 = vshll.u32 %v6181_v57, 16  ;;  %5572 = vmatprep.mubr.msk.bf16.mxu1 %vm649_vm3, %v4981_v39  ;;  %v2343_v63 = vsel %vm6268_vm2, %v2338_v47, %v2342_v8  ;;  %v2351_v6 = vor.u32 %v2350_v16, %v2347_v34  ;;  %v2361_v30 = vor.u32 %v2360_v28, %v2356_v24 }
 0x161   : > { %5716 = vmatprep.mubr.msk.bf16.mxu0 %vm649_vm3, %v5213_v49  ;;  %v4308_v52 = vrot.slane %v6182_v46, 5  ;;  %v4982_v11 = vcombine.low %v2309_v10, %v2319_v13  ;;  %v5214_v29 = vcombine.low %v4295_v38, %v4298_v32  ;;  %v4983_v43 = vcombine.low %v2333_v58, %v2343_v63 }
 0x162   : > { %v5215_v50 = vcombine.low %v4302_v55, %v4305_v14  ;;  %v2366_v59 = vrot.slane %v2364_v33, 5  ;;  %v5196_v61 = vrot.slane %v6183_v3, 9  ;;  %v2352_v1 = vrot.slane %v2351_v6, 4 }
 0x163   : > { %v2362_v0 = vrot.slane %v2361_v30, 4  ;;  %v4310_v23 = vrot.slane %v4308_v52, 4  ;;  %v4311_v19 = vrot.slane %v7698_v2, 5 }
 0x164   : > { %v4309_v62 = vsel %vm6523_vm6, %v5196_v61, %v4308_v52  ;;  %v2357_v44 = vsel %vm6268_vm2, %v2352_v1, %v2356_v24 }
 0x165   : > { %v2367_v53 = vsel %vm6268_vm2, %v2362_v0, %v2366_v59  ;;  %v4312_v2 = vsel %vm6523_vm6, %v4310_v23, %v4311_v19 }
 0x166   : > { %v4984_v20 = vcombine.low %v2357_v44, %v2367_v53  ;;  %v5216_v60 = vcombine.low %v4309_v62, %v4312_v2 }
 0x167   : > { %5573 = vmatmul.mubr.msk.bf16.gmra.mrb[24].mxu1 %vm649_vm3, %v4982_v11 }
 0x168   : > { %5717 = vmatmul.mubr.msk.bf16.gmra.mrb[24].mxu0 %vm649_vm3, %v5214_v29  ;;  %5576 = vmatprep.mubr.msk.bf16.mxu1 %vm649_vm3, %v4983_v43 }
 0x169   : > { %5720 = vmatprep.mubr.msk.bf16.mxu0 %vm649_vm3, %v5215_v50 }
 0x16f   : > { %5577 = vmatmul.mubr.msk.bf16.gmra.mrb[28].mxu1 %vm649_vm3, %v4984_v20 }
 0x170   : > { %5721 = vmatmul.mubr.msk.bf16.gmra.mrb[28].mxu0 %vm649_vm3, %v5216_v60 }
 0x1ea   : > { %v5514_v40 = vpop.f32.mrb[0].mxu1 }
 0x1eb   : > { %v1825_v41 = vpop.f32.mrb[1].mxu1 }
 0x1ec   : > { %v5515_v56 = vpop.f32.mrb[2].mxu1 }
 0x1ed   : > { %v1828_v18 = vpop.f32.mrb[3].mxu1 }
 0x1f2   : > { %v5518_v54 = vpop.f32.mrb[4].mxu1 }
 0x1f3   : > { %v1841_v49 = vpop.f32.mrb[5].mxu1 }
 0x1f4   : > { %v5519_v21 = vpop.f32.mrb[6].mxu1 }
 0x1f5   : > { %v1844_v9 = vpop.f32.mrb[7].mxu1 }
 0x1fa   : > { %v5522_v22 = vpop.f32.mrb[8].mxu1 }
 0x1fb   : > { %v1857_v31 = vpop.f32.mrb[9].mxu1 }
 0x1fc   : > { %v5523_v5 = vpop.f32.mrb[10].mxu1 }
 0x1fd   : > { %v1860_v36 = vpop.f32.mrb[11].mxu1 }
 0x202   : > { %v5526_v51 = vpop.f32.mrb[12].mxu1 }
 0x203   : > { %v1873_v15 = vpop.f32.mrb[13].mxu1 }
 0x204   : > { %v5527_v48 = vpop.f32.mrb[14].mxu1 }
 0x205   : > { %v1876_v37 = vpop.f32.mrb[15].mxu1 }
 0x20b   : > { %v5694_v39 = vpop.f32.mrb[0].mxu0 }
 0x20c   : > { %v5728_v42 = vadd.f32 %v5694_v39, %v5514_v40  ;;  %v4460_v4 = vpop.f32.mrb[1].mxu0 }
 0x20d   : > { %v5695_v25 = vpop.f32.mrb[2].mxu0  ;;  %v5729_v7 = vadd.f32 %v4460_v4, %v1825_v41 }
 0x20e   : > { %v5730_v12 = vadd.f32 %v5695_v25, %v5515_v56  ;;  %v4463_v8 = vpop.f32.mrb[3].mxu0 }
 0x20f   : > { %v5731_v35 = vadd.f32 %v4463_v8, %v1828_v18  ;;  %4619 = vxpose.xlu0.b32.start [1/16] (narrow) %v5729_v7, 8 }
 0x213   : > { %v5698_v45 = vpop.f32.mrb[4].mxu0  ;;  %4620 = vxpose.xlu0.b32.cont [2/16] (narrow) %v5731_v35, 8 }
 0x214   : > { %v5732_v17 = vadd.f32 %v5698_v45, %v5518_v54  ;;  %v4476_v27 = vpop.f32.mrb[5].mxu0 }
 0x215   : > { %v5733_v26 = vadd.f32 %v4476_v27, %v1841_v49  ;;  %v5699_v34 = vpop.f32.mrb[6].mxu0 }
 0x216   : > { %v5734_v47 = vadd.f32 %v5699_v34, %v5519_v21  ;;  %v4479_v16 = vpop.f32.mrb[7].mxu0 }
 0x217   : > { %v5735_v24 = vadd.f32 %v4479_v16, %v1844_v9  ;;  %4621 = vxpose.xlu0.b32.cont [3/16] (narrow) %v5728_v42, 8 }
 0x21b   : > { %v5702_v28 = vpop.f32.mrb[8].mxu0  ;;  %4622 = vxpose.xlu0.b32.cont [4/16] (narrow) %v5730_v12, 8 }
 0x21c   : > { %v5736_v10 = vadd.f32 %v5702_v28, %v5522_v22  ;;  %v4492_v13 = vpop.f32.mrb[9].mxu0 }
 0x21d   : > { %v5737_v38 = vadd.f32 %v4492_v13, %v1857_v31  ;;  %v5703_v32 = vpop.f32.mrb[10].mxu0 }
 0x21e   : > { %v5738_v58 = vadd.f32 %v5703_v32, %v5523_v5  ;;  %v4495_v55 = vpop.f32.mrb[11].mxu0 }
 0x21f   : > { %v5739_v14 = vadd.f32 %v4495_v55, %v1860_v36  ;;  %4623 = vxpose.xlu0.b32.cont [5/16] (narrow) %v5733_v26, 8 }
 0x223   : > { %v5706_v57 = vpop.f32.mrb[12].mxu0  ;;  %4624 = vxpose.xlu0.b32.cont [6/16] (narrow) %v5735_v24, 8 }
 0x224   : > { %v8178_v33 = vadd.f32 %v5706_v57, %v5526_v51  ;;  %v4508_v63 = vpop.f32.mrb[13].mxu0 }
 0x225   : > { %v5741_v6 = vadd.f32 %v4508_v63, %v1873_v15  ;;  %v5707_v30 = vpop.f32.mrb[14].mxu0 }
 0x226   : > { %v8180_v46 = vadd.f32 %v5707_v30, %v5527_v48  ;;  %v4511_v52 = vpop.f32.mrb[15].mxu0 }
 0x227   : > { %v5743_v11 = vadd.f32 %v4511_v52, %v1876_v37  ;;  %4625 = vxpose.xlu0.b32.cont [7/16] (narrow) %v5732_v17, 8 }
 0x22a   : > { %v5566_v43 = vpop.f32.mrb[16].mxu1 }
 0x22b   : > { %v5710_v29 = vpop.f32.mrb[16].mxu0  ;;  %4626 = vxpose.xlu0.b32.cont [8/16] (narrow) %v5734_v47, 8  ;;  %v2579_v59 = vpop.f32.mrb[17].mxu1 }
 0x22c   : > { %v5744_v50 = vadd.f32 %v5710_v29, %v5566_v43  ;;  %v4524_v3 = vpop.f32.mrb[17].mxu0  ;;  %v5567_v61 = vpop.f32.mrb[18].mxu1 }
 0x22d   : > { %v5711_v1 = vpop.f32.mrb[18].mxu0  ;;  %v5745_v0 = vadd.f32 %v4524_v3, %v2579_v59  ;;  %v2582_v19 = vpop.f32.mrb[19].mxu1 }
 0x22e   : > { %v5746_v23 = vadd.f32 %v5711_v1, %v5567_v61  ;;  %v4527_v62 = vpop.f32.mrb[19].mxu0 }
 0x22f   : > { %v5747_v44 = vadd.f32 %v4527_v62, %v2582_v19  ;;  %4627 = vxpose.xlu0.b32.cont [9/16] (narrow) %v5737_v38, 8  ;;  %4651 = vxpose.xlu1.b32.start [1/16] (narrow) %v5745_v0, 8 }
 0x232   : > { %v5570_v2 = vpop.f32.mrb[20].mxu1 }
 0x233   : > { %v5714_v53 = vpop.f32.mrb[20].mxu0  ;;  %4628 = vxpose.xlu0.b32.cont [10/16] (narrow) %v5739_v14, 8  ;;  %4652 = vxpose.xlu1.b32.cont [2/16] (narrow) %v5747_v44, 8  ;;  %v2595_v60 = vpop.f32.mrb[21].mxu1 }
 0x234   : > { %v5748_v20 = vadd.f32 %v5714_v53, %v5570_v2  ;;  %v4540_v40 = vpop.f32.mrb[21].mxu0  ;;  %v5571_v56 = vpop.f32.mrb[22].mxu1 }
 0x235   : > { %v5749_v41 = vadd.f32 %v4540_v40, %v2595_v60  ;;  %v5715_v18 = vpop.f32.mrb[22].mxu0  ;;  %v2598_v49 = vpop.f32.mrb[23].mxu1 }
 0x236   : > { %v5750_v54 = vadd.f32 %v5715_v18, %v5571_v56  ;;  %v4543_v21 = vpop.f32.mrb[23].mxu0 }
 0x237   : > { %v5751_v9 = vadd.f32 %v4543_v21, %v2598_v49  ;;  %4629 = vxpose.xlu0.b32.cont [11/16] (narrow) %v5736_v10, 8  ;;  %4653 = vxpose.xlu1.b32.cont [3/16] (narrow) %v5744_v50, 8 }
 0x23a   : > { %v5574_v31 = vpop.f32.mrb[24].mxu1 }
 0x23b   : > { %v5718_v22 = vpop.f32.mrb[24].mxu0  ;;  %4630 = vxpose.xlu0.b32.cont [12/16] (narrow) %v5738_v58, 8  ;;  %4654 = vxpose.xlu1.b32.cont [4/16] (narrow) %v5746_v23, 8  ;;  %v2611_v36 = vpop.f32.mrb[25].mxu1 }
 0x23c   : > { %v5752_v5 = vadd.f32 %v5718_v22, %v5574_v31  ;;  %v4556_v51 = vpop.f32.mrb[25].mxu0  ;;  %v5575_v48 = vpop.f32.mrb[26].mxu1 }
 0x23d   : > { %v5753_v15 = vadd.f32 %v4556_v51, %v2611_v36  ;;  %v5719_v37 = vpop.f32.mrb[26].mxu0  ;;  %v2614_v42 = vpop.f32.mrb[27].mxu1 }
 0x23e   : > { %v5754_v39 = vadd.f32 %v5719_v37, %v5575_v48  ;;  %v4559_v4 = vpop.f32.mrb[27].mxu0 }
 0x23f   : > { %v5755_v25 = vadd.f32 %v4559_v4, %v2614_v42  ;;  %4631 = vxpose.xlu0.b32.cont [13/16] (narrow) %v5741_v6, 8  ;;  %4655 = vxpose.xlu1.b32.cont [5/16] (narrow) %v5749_v41, 8 }
 0x242   : > { %v5578_v12 = vpop.f32.mrb[28].mxu1 }
 0x243   : > { %v5722_v7 = vpop.f32.mrb[28].mxu0  ;;  %4632 = vxpose.xlu0.b32.cont [14/16] (narrow) %v5743_v11, 8  ;;  %4656 = vxpose.xlu1.b32.cont [6/16] (narrow) %v5751_v9, 8  ;;  %v2627_v35 = vpop.f32.mrb[29].mxu1 }
 0x244   : > { %v5756_v8 = vadd.f32 %v5722_v7, %v5578_v12  ;;  %v4572_v45 = vpop.f32.mrb[29].mxu0  ;;  %v5579_v27 = vpop.f32.mrb[30].mxu1 }
 0x245   : > { %v5757_v17 = vadd.f32 %v4572_v45, %v2627_v35  ;;  %v5723_v26 = vpop.f32.mrb[30].mxu0  ;;  %v2630_v47 = vpop.f32.mrb[31].mxu1 }
 0x246   : > { %v5758_v34 = vadd.f32 %v5723_v26, %v5579_v27  ;;  %v4575_v16 = vpop.f32.mrb[31].mxu0 }
 0x247   : > { %v5759_v24 = vadd.f32 %v4575_v16, %v2630_v47  ;;  %4633 = vxpose.xlu0.b32.cont [15/16] (narrow) %v8178_v33, 8  ;;  %4657 = vxpose.xlu1.b32.cont [7/16] (narrow) %v5748_v20, 8 }
 0x24b   : > { %4634 = vxpose.xlu0.b32.end [16/16] (narrow) %v8180_v46, 8  ;;  %4658 = vxpose.xlu1.b32.cont [8/16] (narrow) %v5750_v54, 8 }
 0x24f   : > { %4659 = vxpose.xlu1.b32.cont [9/16] (narrow) %v5753_v15, 8 }
 0x253   : > { %4660 = vxpose.xlu1.b32.cont [10/16] (narrow) %v5755_v25, 8 }
 0x257   : > { %4661 = vxpose.xlu1.b32.cont [11/16] (narrow) %v5752_v5, 8 }
 0x25b   : > { %4662 = vxpose.xlu1.b32.cont [12/16] (narrow) %v5754_v39, 8 }
 0x25f   : > { %4663 = vxpose.xlu1.b32.cont [13/16] (narrow) %v5757_v17, 8 }
 0x263   : > { %4664 = vxpose.xlu1.b32.cont [14/16] (narrow) %v5759_v24, 8 }
 0x267   : > { %4665 = vxpose.xlu1.b32.cont [15/16] (narrow) %v5756_v8, 8 }
 0x26b   : > { %4666 = vxpose.xlu1.b32.end [16/16] (narrow) %v5758_v34, 8 }
 0x28f   : > { %v4635_v28 = vpop.trf.xlu0 }
 0x290   : > { %6059 = vtanh.f32 %v4635_v28 }
 0x29a   : > { %v6060_v13 = vpop.eup %6059 }
 0x2af   : > { %v4667_v10 = vpop.trf.xlu1 }
 0x2b0   : > { %6061 = vtanh.f32 %v4667_v10 }
 0x2ba   : > { %v6062_v38 = vpop.eup %6061 }
 0x2bb   : > { %v4687_v32 = vcombine.low %v6060_v13, %v6062_v38 }
 0x2bd   : > { %4689 = vst [vmem:[%s143_s6] sm:$0x77] %v4687_v32 }
 0x2be PF: > { %s12_s9 = sadd.s32 1, %s6190_s9  }
 0x2bf   : > { %p9_p4 = scmp.ge.s32.totalorder %s12_s9, 4  }
 0x2c1   :  { %11 = sbr.rel (!%p9_p4) target bundleno = 1 (0x1), region = 68 }

</bundles_post_ra>
